<compile_context>
chip_gen: v7x
topology: tpu7x:2x2x1
jax: 0.10.0
libtpu: 0.0.40
codegen_flags: <defaults>
</compile_context>

<pallas_src>
import functools

import jax
import jax.numpy as jnp
import numpy as np
from jax.experimental import pallas as pl
from jax.experimental.pallas import tpu as pltpu


def _round_up(x, m):
    return (x + m - 1) // m * m


# ----------------------------------------------------------------------------
# Parameter init, matching weight_init(mode='kaiming_normal') in the module.
# ----------------------------------------------------------------------------
def make_params(key, in_channels, out_channels, kernel,
                init_weight=1.0, init_bias=0.0):
    fan_in = in_channels * kernel * kernel
    kw, kb = jax.random.split(key)
    weight = (np.sqrt(1.0 / fan_in)
              * jax.random.normal(kw, (out_channels, in_channels, kernel, kernel),
                                  dtype=jnp.float32)) * init_weight
    bias = (np.sqrt(1.0 / fan_in)
            * jax.random.normal(kb, (out_channels,), dtype=jnp.float32)) * init_bias
    return weight, bias


# ----------------------------------------------------------------------------
# Pallas kernel: one grid step per (batch element, row tile).
#   x_ref     : (1, TH+2p, W+2p, Cinp)   bf16 halo'd NHWC input tile
#   w_ref     : (K*K*Cinp, Coutp)        bf16 im2col weights (VMEM resident)
#   b_ref     : (1, Coutp)               f32 bias
#   o_ref     : (1, TH, W, Coutp)        f32 output tile
#   patch_ref : VMEM (TH*W, K*K*Cinp)    bf16 im2col scratch
# ----------------------------------------------------------------------------
def conv2d_kernel(x_ref, w_ref, b_ref, o_ref, patch_ref, *, TH, W, K, Cinp, Coutp):
    x = x_ref[0]                                    # (TH+2p, W+2p, Cinp)
    # Build the im2col matrix once (9 shifted copies), then ONE deep matmul.
    # Column offsets are multiples of Cinp (multiple of 128) -> lane-aligned
    # stores into the scratch.  (The kw=1,2 source slices are still
    # sublane-shifted copies; pltpu.roll on the W axis is a further option.)
    for kh in range(K):
        for kw in range(K):
            j0 = (kh * K + kw) * Cinp
            patch_ref[:, j0:j0 + Cinp] = (
                x[kh:kh + TH, kw:kw + W, :].reshape(TH * W, Cinp))
    acc = jnp.dot(patch_ref[...], w_ref[...],
                  preferred_element_type=jnp.float32)     # (TH*W, Coutp) f32
    acc = acc + b_ref[...]
    o_ref[0] = acc.reshape(TH, W, Coutp).astype(o_ref.dtype)


def _choose_tile_h(H, W, K, Cinp, Coutp, compute_itemsize,
                   budget_bytes=32 * 1024 * 1024):
    """Largest row-tile TH (divisor of H, <=64) whose per-step VMEM fits budget."""
    pad = K // 2
    best = 1
    for th in range(1, min(H, 64) + 1):
        if H % th:
            continue
        thp, wp = th + 2 * pad, W + 2 * pad
        vmem = (2 * thp * wp * Cinp * compute_itemsize       # dbl-buffered input tile
                + 2 * th * W * Coutp * 4                     # dbl-buffered f32 output
                + K * K * Cinp * Coutp * compute_itemsize    # resident weights
                + th * W * K * K * Cinp * compute_itemsize   # im2col scratch
                + th * W * Coutp * 4)                        # matmul accumulator
        if vmem <= budget_bytes:
            best = th
    return best


def conv2d_forward(x_nchw, weight, bias=None, *, tile_h=None,
                   compute_dtype=jnp.bfloat16,
                   vmem_limit_bytes=64 * 1024 * 1024):
    """Conv2d.forward for up=down=False, kernel>=1 (odd), optional bias.

    x_nchw : (N, Cin, H, W) float32
    weight : (Cout, Cin, K, K)
    bias   : (Cout,) or None
    returns: (N, Cout, H, W) float32
    """
    N, Cin, H, W = x_nchw.shape
    Cout, _, K, _ = weight.shape
    pad = K // 2
    Cinp = _round_up(Cin, 128)       # lane-dense reduction channels
    Coutp = _round_up(Cout, 128)     # lane-dense output channels
    itemsize = jnp.dtype(compute_dtype).itemsize

    TH = tile_h if tile_h is not None else _choose_tile_h(
        H, W, K, Cinp, Coutp, itemsize)
    assert H % TH == 0, f"tile_h={TH} must divide H={H}"
    HT = H // TH
    THp, Wp = TH + 2 * pad, W + 2 * pad

    # ---- layout glue (transpose + pad + cast fuse into one XLA pass) ----
    x = jnp.transpose(x_nchw, (0, 2, 3, 1)).astype(compute_dtype)        # (N,H,W,Cin)
    x = jnp.pad(x, ((0, 0), (pad, pad), (pad, pad), (0, Cinp - Cin)))    # (N,Hp,Wp,Cinp)
    # Halo'd, overlapping row tiles folded onto a leading (N*HT) axis so every
    # Pallas block is a plain non-overlapping BlockSpec (auto double-buffered).
    # TODO(synk): replace with an in-kernel make_async_copy halo fetch to avoid
    # materializing the (1 + 2*pad/TH)x duplicated tiles in HBM.
    x_tiles = jnp.stack([x[:, h * TH:h * TH + THp] for h in range(HT)], axis=1)
    x_tiles = x_tiles.reshape(N * HT, THp, Wp, Cinp)

    # im2col weights: (Cout,Cin,K,K) -> (K,K,Cin,Cout) -> pad -> (K*K*Cinp, Coutp)
    w = jnp.transpose(weight, (2, 3, 1, 0))
    w = jnp.pad(w, ((0, 0), (0, 0), (0, Cinp - Cin), (0, Coutp - Cout)))
    w = w.reshape(K * K * Cinp, Coutp).astype(compute_dtype)

    if bias is None:
        bias = jnp.zeros((Cout,), jnp.float32)
    b = jnp.pad(bias.astype(jnp.float32), (0, Coutp - Cout)).reshape(1, Coutp)

    kernel = functools.partial(conv2d_kernel, TH=TH, W=W, K=K,
                               Cinp=Cinp, Coutp=Coutp)

    out_nhwc = pl.pallas_call(
        kernel,
        out_shape=jax.ShapeDtypeStruct((N, H, W, Coutp), jnp.float32),
        grid_spec=pltpu.PrefetchScalarGridSpec(
            num_scalar_prefetch=0,
            grid=(N, HT),
            in_specs=[
                pl.BlockSpec((1, THp, Wp, Cinp),
                             lambda n, h: (n * HT + h, 0, 0, 0)),
                # weights / bias: constant index_map -> stay VMEM-resident
                pl.BlockSpec((K * K * Cinp, Coutp), lambda n, h: (0, 0)),
                pl.BlockSpec((1, Coutp), lambda n, h: (0, 0)),
            ],
            out_specs=pl.BlockSpec((1, TH, W, Coutp),
                                   lambda n, h: (n, h, 0, 0)),
            scratch_shapes=[pltpu.VMEM((TH * W, K * K * Cinp), compute_dtype)],
        ),
        compiler_params=pltpu.CompilerParams(
            dimension_semantics=("parallel", "parallel"),
            vmem_limit_bytes=vmem_limit_bytes),
    )(x_tiles, w, b)

    out = out_nhwc[..., :Cout]                       # drop channel padding
    return jnp.transpose(out, (0, 3, 1, 2))          # back to NCHW


def conv2d_reference(x_nchw, weight, bias, compute_dtype=jnp.bfloat16):
    """XLA reference with the same bf16-in / f32-accumulate numerics."""
    pad = weight.shape[-1] // 2
    out = jax.lax.conv_general_dilated(
        x_nchw.astype(compute_dtype), weight.astype(compute_dtype),
        window_strides=(1, 1),
        padding=((pad, pad), (pad, pad)),
        dimension_numbers=("NCHW", "OIHW", "NCHW"),
        preferred_element_type=jnp.float32)
    return out + bias.reshape(1, -1, 1, 1).astype(jnp.float32)


if __name__ == "__main__":
    key = jax.random.PRNGKey(0)
    k_x, k_p, k_x2, k_p2 = jax.random.split(key, 4)

    # 3x3 "same" conv (the SongUNet conv0/conv1/aux_conv shape class).
    N, Cin, Cout, H, W, K = 2, 4, 8, 16, 16, 3
    x = jax.random.normal(k_x, (N, Cin, H, W), dtype=jnp.float32)
    weight, bias = make_params(k_p, Cin, Cout, K, init_weight=1.0, init_bias=0.5)

    out = conv2d_forward(x, weight, bias, tile_h=8)        # grid = (2, 2)
    out = jax.block_until_ready(out)
    ref = conv2d_reference(x, weight, bias)
    assert out.shape == (N, Cout, H, W)
    assert out.dtype == jnp.float32
    assert jnp.allclose(out, ref, atol=1e-3, rtol=1e-3), \
        float(jnp.max(jnp.abs(out - ref)))

    # 1x1 conv (the SongUNet skip/qkv/proj shape class), auto tile chooser.
    Cin2, Cout2, K2 = 8, 4, 1
    x2 = jax.random.normal(k_x2, (N, Cin2, H, W), dtype=jnp.float32)
    w2, b2 = make_params(k_p2, Cin2, Cout2, K2, init_weight=1.0, init_bias=0.5)
    out2 = jax.block_until_ready(conv2d_forward(x2, w2, b2))
    ref2 = conv2d_reference(x2, w2, b2)
    assert out2.shape == (N, Cout2, H, W)
    assert jnp.allclose(out2, ref2, atol=1e-3, rtol=1e-3), \
        float(jnp.max(jnp.abs(out2 - ref2)))

    print("KERNEL_OK")
</pallas_src>

<mosaic_0001>
module attributes {stable_mosaic.version = 11 : i64} {
  func.func @conv2d_kernel(%arg0: i32, %arg1: i32, %arg2: memref<1x10x18x128xbf16, #tpu.memory_space<vmem>>, %arg3: memref<1152x128xbf16, #tpu.memory_space<vmem>>, %arg4: memref<1x128xf32, #tpu.memory_space<vmem>>, %arg5: memref<1x8x16x128xf32, #tpu.memory_space<vmem>>, %arg6: memref<128x1152xbf16, #tpu.memory_space<vmem>>) attributes {dimension_semantics = [#tpu.dimension_semantics<parallel>, #tpu.dimension_semantics<parallel>], iteration_bounds = array<i64: 2, 2>, scalar_prefetch = 0 : i64, scratch_operands = 1 : i64, tpu.core_type = #tpu.core_type<tc>, window_params = [{transform_indices = @transform_0, window_bounds = array<i64: 1, 10, 18, 128>}, {pipeline_mode = #tpu.pipeline_mode<synchronous>, transform_indices = @transform_1, window_bounds = array<i64: 1152, 128>}, {pipeline_mode = #tpu.pipeline_mode<synchronous>, transform_indices = @transform_2, window_bounds = array<i64: 1, 128>}, {transform_indices = @transform_3, window_bounds = array<i64: 1, 8, 16, 128>}]} {
    %c0 = arith.constant 0 : index
    %c0_0 = arith.constant 0 : index
    %c0_1 = arith.constant 0 : index
    %c0_2 = arith.constant 0 : index
    %0 = vector.load %arg2[%c0, %c0_0, %c0_1, %c0_2] : memref<1x10x18x128xbf16, #tpu.memory_space<vmem>>, vector<1x10x18x128xbf16>
    %1 = vector.shape_cast %0 : vector<1x10x18x128xbf16> to vector<10x18x128xbf16>
    %2 = vector.extract_strided_slice %1 {offsets = [0, 0, 0], sizes = [8, 16, 128], strides = [1, 1, 1]} : vector<10x18x128xbf16> to vector<8x16x128xbf16>
    %3 = vector.shape_cast %2 : vector<8x16x128xbf16> to vector<128x128xbf16>
    %c0_3 = arith.constant 0 : index
    %c0_4 = arith.constant 0 : index
    %4 = vector.load %arg6[%c0_3, %c0_4] : memref<128x1152xbf16, #tpu.memory_space<vmem>>, vector<128x128xbf16>
    tpu.vector_store %arg6[%c0_3, %c0_4], %3 {strides = array<i32>} : memref<128x1152xbf16, #tpu.memory_space<vmem>>, vector<128x128xbf16>,
    %5 = vector.extract_strided_slice %1 {offsets = [0, 1, 0], sizes = [8, 16, 128], strides = [1, 1, 1]} : vector<10x18x128xbf16> to vector<8x16x128xbf16>
    %6 = vector.shape_cast %5 : vector<8x16x128xbf16> to vector<128x128xbf16>
    %c0_5 = arith.constant 0 : index
    %c128 = arith.constant 128 : index
    %7 = vector.load %arg6[%c0_5, %c128] : memref<128x1152xbf16, #tpu.memory_space<vmem>>, vector<128x128xbf16>
    tpu.vector_store %arg6[%c0_5, %c128], %6 {strides = array<i32>} : memref<128x1152xbf16, #tpu.memory_space<vmem>>, vector<128x128xbf16>,
    %8 = vector.extract_strided_slice %1 {offsets = [0, 2, 0], sizes = [8, 16, 128], strides = [1, 1, 1]} : vector<10x18x128xbf16> to vector<8x16x128xbf16>
    %9 = vector.shape_cast %8 : vector<8x16x128xbf16> to vector<128x128xbf16>
    %c0_6 = arith.constant 0 : index
    %c256 = arith.constant 256 : index
    %10 = vector.load %arg6[%c0_6, %c256] : memref<128x1152xbf16, #tpu.memory_space<vmem>>, vector<128x128xbf16>
    tpu.vector_store %arg6[%c0_6, %c256], %9 {strides = array<i32>} : memref<128x1152xbf16, #tpu.memory_space<vmem>>, vector<128x128xbf16>,
    %11 = vector.extract_strided_slice %1 {offsets = [1, 0, 0], sizes = [8, 16, 128], strides = [1, 1, 1]} : vector<10x18x128xbf16> to vector<8x16x128xbf16>
    %12 = vector.shape_cast %11 : vector<8x16x128xbf16> to vector<128x128xbf16>
    %c0_7 = arith.constant 0 : index
    %c384 = arith.constant 384 : index
    %13 = vector.load %arg6[%c0_7, %c384] : memref<128x1152xbf16, #tpu.memory_space<vmem>>, vector<128x128xbf16>
    tpu.vector_store %arg6[%c0_7, %c384], %12 {strides = array<i32>} : memref<128x1152xbf16, #tpu.memory_space<vmem>>, vector<128x128xbf16>,
    %14 = vector.extract_strided_slice %1 {offsets = [1, 1, 0], sizes = [8, 16, 128], strides = [1, 1, 1]} : vector<10x18x128xbf16> to vector<8x16x128xbf16>
    %15 = vector.shape_cast %14 : vector<8x16x128xbf16> to vector<128x128xbf16>
    %c0_8 = arith.constant 0 : index
    %c512 = arith.constant 512 : index
    %16 = vector.load %arg6[%c0_8, %c512] : memref<128x1152xbf16, #tpu.memory_space<vmem>>, vector<128x128xbf16>
    tpu.vector_store %arg6[%c0_8, %c512], %15 {strides = array<i32>} : memref<128x1152xbf16, #tpu.memory_space<vmem>>, vector<128x128xbf16>,
    %17 = vector.extract_strided_slice %1 {offsets = [1, 2, 0], sizes = [8, 16, 128], strides = [1, 1, 1]} : vector<10x18x128xbf16> to vector<8x16x128xbf16>
    %18 = vector.shape_cast %17 : vector<8x16x128xbf16> to vector<128x128xbf16>
    %c0_9 = arith.constant 0 : index
    %c640 = arith.constant 640 : index
    %19 = vector.load %arg6[%c0_9, %c640] : memref<128x1152xbf16, #tpu.memory_space<vmem>>, vector<128x128xbf16>
    tpu.vector_store %arg6[%c0_9, %c640], %18 {strides = array<i32>} : memref<128x1152xbf16, #tpu.memory_space<vmem>>, vector<128x128xbf16>,
    %20 = vector.extract_strided_slice %1 {offsets = [2, 0, 0], sizes = [8, 16, 128], strides = [1, 1, 1]} : vector<10x18x128xbf16> to vector<8x16x128xbf16>
    %21 = vector.shape_cast %20 : vector<8x16x128xbf16> to vector<128x128xbf16>
    %c0_10 = arith.constant 0 : index
    %c768 = arith.constant 768 : index
    %22 = vector.load %arg6[%c0_10, %c768] : memref<128x1152xbf16, #tpu.memory_space<vmem>>, vector<128x128xbf16>
    tpu.vector_store %arg6[%c0_10, %c768], %21 {strides = array<i32>} : memref<128x1152xbf16, #tpu.memory_space<vmem>>, vector<128x128xbf16>,
    %23 = vector.extract_strided_slice %1 {offsets = [2, 1, 0], sizes = [8, 16, 128], strides = [1, 1, 1]} : vector<10x18x128xbf16> to vector<8x16x128xbf16>
    %24 = vector.shape_cast %23 : vector<8x16x128xbf16> to vector<128x128xbf16>
    %c0_11 = arith.constant 0 : index
    %c896 = arith.constant 896 : index
    %25 = vector.load %arg6[%c0_11, %c896] : memref<128x1152xbf16, #tpu.memory_space<vmem>>, vector<128x128xbf16>
    tpu.vector_store %arg6[%c0_11, %c896], %24 {strides = array<i32>} : memref<128x1152xbf16, #tpu.memory_space<vmem>>, vector<128x128xbf16>,
    %26 = vector.extract_strided_slice %1 {offsets = [2, 2, 0], sizes = [8, 16, 128], strides = [1, 1, 1]} : vector<10x18x128xbf16> to vector<8x16x128xbf16>
    %27 = vector.shape_cast %26 : vector<8x16x128xbf16> to vector<128x128xbf16>
    %c0_12 = arith.constant 0 : index
    %c1024 = arith.constant 1024 : index
    %28 = vector.load %arg6[%c0_12, %c1024] : memref<128x1152xbf16, #tpu.memory_space<vmem>>, vector<128x128xbf16>
    tpu.vector_store %arg6[%c0_12, %c1024], %27 {strides = array<i32>} : memref<128x1152xbf16, #tpu.memory_space<vmem>>, vector<128x128xbf16>,
    %c0_13 = arith.constant 0 : index
    %c0_14 = arith.constant 0 : index
    %29 = vector.load %arg6[%c0_13, %c0_14] : memref<128x1152xbf16, #tpu.memory_space<vmem>>, vector<128x1152xbf16>
    %c0_15 = arith.constant 0 : index
    %c0_16 = arith.constant 0 : index
    %30 = vector.load %arg3[%c0_15, %c0_16] : memref<1152x128xbf16, #tpu.memory_space<vmem>>, vector<1152x128xbf16>
    %cst = arith.constant dense<0.000000e+00> : vector<128x128xf32>
    %31 = tpu.matmul %29, %30, %cst {dimension_numbers = #tpu.dot_dimension_numbers<[1], [0], [0], [1], [0, 0, 1, 1], [], []>} : vector<128x1152xbf16>, vector<1152x128xbf16>, vector<128x128xf32> -> vector<128x128xf32>
    %c0_17 = arith.constant 0 : index
    %c0_18 = arith.constant 0 : index
    %32 = vector.load %arg4[%c0_17, %c0_18] : memref<1x128xf32, #tpu.memory_space<vmem>>, vector<1x128xf32>
    %33 = vector.broadcast %32 : vector<1x128xf32> to vector<128x128xf32>
    %34 = arith.addf %31, %33 : vector<128x128xf32>
    %35 = vector.shape_cast %34 : vector<128x128xf32> to vector<8x16x128xf32>
    %c0_19 = arith.constant 0 : index
    %c0_20 = arith.constant 0 : index
    %c0_21 = arith.constant 0 : index
    %c0_22 = arith.constant 0 : index
    %36 = vector.load %arg5[%c0_19, %c0_20, %c0_21, %c0_22] : memref<1x8x16x128xf32, #tpu.memory_space<vmem>>, vector<1x8x16x128xf32>
    %37 = vector.shape_cast %36 : vector<1x8x16x128xf32> to vector<8x16x128xf32>
    %38 = vector.shape_cast %35 : vector<8x16x128xf32> to vector<1x8x16x128xf32>
    tpu.vector_store %arg5[%c0_19, %c0_20, %c0_21, %c0_22], %38 {strides = array<i32>} : memref<1x8x16x128xf32, #tpu.memory_space<vmem>>, vector<1x8x16x128xf32>,
    return
  }
  func.func @transform_0(%arg0: i32, %arg1: i32) -> (i32, i32, i32, i32) {
    %c2_i32 = arith.constant 2 : i32
    %0 = arith.muli %arg0, %c2_i32 : i32
    %1 = arith.addi %0, %arg1 : i32
    %c0_i32 = arith.constant 0 : i32
    %c0_i32_0 = arith.constant 0 : i32
    %c0_i32_1 = arith.constant 0 : i32
    %c0_i32_2 = arith.constant 0 : i32
    return %1, %c0_i32, %c0_i32_0, %c0_i32_1 : i32, i32, i32, i32
  }
  func.func @transform_1(%arg0: i32, %arg1: i32) -> (i32, i32) {
    %c0_i32 = arith.constant 0 : i32
    %c0_i32_0 = arith.constant 0 : i32
    %c0_i32_1 = arith.constant 0 : i32
    return %c0_i32, %c0_i32_0 : i32, i32
  }
  func.func @transform_2(%arg0: i32, %arg1: i32) -> (i32, i32) {
    %c0_i32 = arith.constant 0 : i32
    %c0_i32_0 = arith.constant 0 : i32
    %c0_i32_1 = arith.constant 0 : i32
    return %c0_i32, %c0_i32_0 : i32, i32
  }
  func.func @transform_3(%arg0: i32, %arg1: i32) -> (i32, i32, i32, i32) {
    %c0_i32 = arith.constant 0 : i32
    %c0_i32_0 = arith.constant 0 : i32
    %c0_i32_1 = arith.constant 0 : i32
    return %arg0, %arg1, %c0_i32, %c0_i32_0 : i32, i32, i32, i32
  }
}

</mosaic_0001>

<bundles_post_ra>
// kernel: tpu_custom_call.1
= control target key start
LH: loop header
LB: loop body
LE: loop exit
PB: predicated region body
PF: predicated region fallthrough
CT: control target
= control target key end

     0   :  { %s3765_s0 = inlined_call_operand.hbm [shape: bf16[4,10,18,128], index: 0, kind: input, shape index: {}]   ;;  %s3766_s1 = inlined_call_operand.hbm [shape: bf16[1152,128], index: 1, kind: input, shape index: {}]   ;;  %s3767_s2 = inlined_call_operand.hbm [shape: f32[1,128], index: 2, kind: input, shape index: {}]   ;;  %s3768_s3 = inlined_call_operand.hbm [shape: f32[2,16,16,128], index: 3, kind: output, shape index: {}]  }
   0x1   :  { %3783 = sst [smem:[#allocation18_spill]] %s3766_s1 }
   0x2   :  { %3784 = sst [smem:[#allocation19_spill]] %s3767_s2 }
   0x3   :  { %3785 = sst [smem:[#allocation20_spill]] %s3768_s3 }
   0x4   :  { %8 = vsyncpa [#allocation4], 0 }
   0x5   :  { %10 = vsyncpa [#allocation4 + $0x1], 0 }
   0x6   :  { %11 = vsyncpa [#allocation7], 0 }
   0x7   :  { %12 = vsyncpa [#allocation5], 0 }
   0x8   :  { %14 = vsyncpa [#allocation5 + $0x1], 0  ;;  %s2998_s12 = smov 0   ;;  %s3000_s13 = smov 0  }
   0x9   :  { %s3002_s14 = smov 0   ;;  %s3004_s15 = smov 0  }
   0xa   :  { %s3006_s16 = smov 0   ;;  %s3008_s17 = smov 0  }
   0xb   :  { %s3010_s18 = smov 0   ;;  %s3012_s19 = smov 0  }
   0xc   :  { %s3014_s20 = smov 0   ;;  %s3016_s21 = smov 0  }
   0xd   :  { %s3018_s22 = smov 0  }
   0xe LB: > { %3786 = sst [smem:[#allocation13_spill]] %s2928_s12  ;;  %s2089_s23 = sadd.s32 4294967295, %s2968_s22   ;;  %s2968_s22 = sphi %s3018_s22, %s20_s22   ;;  %s2964_s21 = sphi %s3016_s21, %s3826_s21   ;;  %s2960_s20 = sphi %s3014_s20, %s3825_s20   ;;  %s2956_s19 = sphi %s3012_s19, %s3824_s19   ;;  %s2952_s18 = sphi %s3010_s18, %s3816_s18   ;;  %s2948_s17 = sphi %s3008_s17, %s3823_s17   ;;  %s2944_s16 = sphi %s3006_s16, %s3822_s16   ;;  %s2940_s15 = sphi %s3004_s15, %s3821_s15   ;;  %s2936_s14 = sphi %s3002_s14, %s3820_s14   ;;  %s2932_s13 = sphi %s3000_s13, %s3819_s13   ;;  %s2928_s12 = sphi %s2998_s12, %s3818_s12  }
   0xf   : > { %3787 = sst [smem:[#allocation14_spill]] %s2960_s20  ;;  %s2090_s24 = sadd.s32 4294967294, %s2968_s22  }
  0x10   : > { %p56_p0 = scmp.ne.s32.totalorder %s2944_s16, %s2940_s15  ;;  %p3054_p1 = scmp.eq.s32.totalorder %s2089_s23, 0 }
  0x11   : > { %p123_p2 = scmp.ne.s32.totalorder %s2936_s14, %s2932_s13  ;;  %p124_p3 = scmp.eq.s32.totalorder %s2089_s23, 3 }
  0x12   : > { %s3788_s25 = scalar_select %p3054_p1, 1, 0 }
  0x13   : > { %p3062_p4 = por %p3054_p1, %p56_p0  ;;  %p129_p5 = scmp.ne.s32.totalorder %s2932_s13, %s2928_s12 }
  0x14   : > { %p3068_p6 = por %p124_p3, %p123_p2  ;;  %p130_p7 = scmp.eq.s32.totalorder %s2090_s24, 3 }
  0x15   : > { %s3789_s26 = scalar_select %p3062_p4, 1, 0 }
  0x16   : > { %s3790_s27 = scalar_select %p3068_p6, 1, 0 }
  0x17   : > { %p2093_p8 = scmp.ge.s32.totalorder %s2968_s22, 1  ;;  %p137_p9 = scmp.lt.s32.totalorder %s2968_s22, 5 }
  0x18   : > { %3791 = sst [smem:[#allocation15_spill]] %s3790_s27  ;;  %p3074_p10 = por %p130_p7, %p129_p5 }
  0x19   : > { %p3078_p11 = pnand %p2093_p8, %p137_p9  ;;  %s2970_s30 = smov [#allocation6]  }
  0x1a   : > { %s3792_s28 = scalar_select %p3074_p10, 1, 0 }
  0x1b   : > { %s3794_s29 = scalar_select %p3078_p11, 1, 0 }
  0x1c   : > { %3793 = sst [smem:[#allocation16_spill]] %s3792_s28  ;;  %s149_s4 = sshll.u32 %s2970_s30, 4  ;;  %s150_s4 = int_to_ptr.vmem [resolvable:$true] %s149_s4 }
  0x1d   : > { %p2559_p12 = pneg %p3078_p11  ;;  %s2971_s6 = smov [#allocation8]  }
  0x1e   : > { %s163_s7 = sshll.u32 %s2971_s6, 4  ;;  %s3796_s1 = sld [smem:[#allocation18_spill]]  ;;  %s3090_s7 = int_to_ptr.vmem [resolvable:$true] %s163_s7 }
  0x1f   : > { %p3086_p13 = pnand %p2559_p12, %p3054_p1 }
  0x21   : > { %p2758_p2 = pneg %p3086_p13 }
  0x24   : > { %s2756_s10 = scalar_lea.hbm %s3796_s1, 9216 }
  0x25   : > { %p2757_p0 = scmp.ne.s32.totalorder %s3796_s1, %s2756_s10  ;;  %p2763_p7 = scmp.lt.u32.totalorder %s2756_s10, %s3796_s1 }
  0x27   : > { %p2759_p3 = pnand %p2758_p2, %p2757_p0 }
  0x29   : > { %p2760_p5 = pneg %p2759_p3 }
  0x2b   : > { %p2765_p8 = pnand %p2763_p7, %p2760_p5 }
  0x2d   : > { %2768 = shalt.err (!%p2765_p8)
}
  0x2e   : > { %s2769_s30 = scalar_lea.vmem %s150_s4, 9216  ;;  %p2777_p6 = scmp.lt.s32.totalorder %s150_s4, %s150_s4 }
  0x2f   : > { %p2770_p9 = scmp.ne.s32.totalorder %s150_s4, %s2769_s30  ;;  %p2778_p1 = scmp.lt.s32.totalorder %s2769_s30, %s2769_s30 }
  0x31   : > { %p2772_p12 = pnand %p2770_p9, %p2758_p2  ;;  %p2779_p4 = por %p2778_p1, %p2777_p6 }
  0x33   : > { %p2773_p10 = pneg %p2772_p12 }
  0x35   : > { %p2780_p11 = pnand %p2779_p4, %p2773_p10 }
  0x37   : > { %2783 = shalt.err (!%p2780_p11)
}
  0x38   : > { %s3776_s6 = smov 64   ;;  %s3777_s8 = smov 4  }
  0x39   : > { %2562 = dma.hbm_to_vmem [thread:$0]  (!%p3086_p13), %s3796_s1, 9216, %s150_s4, [#allocation7], %s3776_s6, %s3776_s6, %s3777_s8  }
  0x3a   : > { %s3797_s2 = sld [smem:[#allocation19_spill]] }
  0x40   : > { %s2784_s23 = scalar_lea.hbm %s3797_s2, 16 }
  0x41   : > { %p2785_p1 = scmp.ne.s32.totalorder %s3797_s2, %s2784_s23  ;;  %p2791_p10 = scmp.lt.u32.totalorder %s2784_s23, %s3797_s2 }
  0x43   : > { %p2787_p4 = pnand %p2785_p1, %p2758_p2 }
  0x45   : > { %p2788_p6 = pneg %p2787_p4 }
  0x47   : > { %p2793_p11 = pnand %p2791_p10, %p2788_p6 }
  0x49   : > { %2796 = shalt.err (!%p2793_p11)
}
  0x4a   : > { %s2797_s4 = scalar_lea.vmem %s3090_s7, 16  ;;  %s2804_s9 = scalar_lea.vmem %s3090_s7, 32 }
  0x4b   : > { %p2798_p0 = scmp.ne.s32.totalorder %s3090_s7, %s2797_s4  ;;  %p2805_p7 = scmp.lt.s32.totalorder %s3090_s7, %s3090_s7 }
  0x4c   : > { %p2806_p8 = scmp.lt.s32.totalorder %s2804_s9, %s2797_s4 }
  0x4d   : > { %p2800_p3 = pnand %p2798_p0, %p2758_p2 }
  0x4e   : > { %p2807_p9 = por %p2806_p8, %p2805_p7 }
  0x4f   : > { %p2801_p5 = pneg %p2800_p3 }
  0x51   : > { %p2808_p12 = pnand %p2807_p9, %p2801_p5 }
  0x53   : > { %2811 = shalt.err (!%p2808_p12)
}
  0x54   : > { %2565 = dma.hbm_to_vmem [thread:$0]  (!%p3086_p13), %s3797_s2, 16, %s3090_s7, [#allocation7]  }
  0x55   : > { %s29_s10 = sadd.s32 1, %s2960_s20  ;;  %s32_s5 = sadd.s32 1, %s2964_s21 }
  0x56   : > { %p30_p2 = scmp.ge.s32.totalorder %s29_s10, 2  ;;  %s2091_s11 = sshll.u32 %s2964_s21, 1 }
  0x57   : > { %s43_s15 = sadd.s32 1, %s2948_s17  ;;  %s37_s23 = sadd.s32 %s2960_s20, %s2091_s11 }
  0x58   : > { %s3828_s10 = smov (%p30_p2, %s29_s10), 0  ;;  %s3830_s5 = smov (!%p30_p2, %s32_s5), %s2964_s21 }
  0x59   : > { %p50_p1 = scmp.ne.s32.totalorder %s2948_s17, %s2944_s16  ;;  %p34_p4 = scmp.ge.s32.totalorder %s3830_s5, 2 }
  0x5a   : > { %p51_p6 = scmp.eq.s32.totalorder %s2968_s22, 0  ;;  %s109_s7 = ssub.s32 %s2960_s20, %s3828_s10 }
  0x5b   : > { %s113_s24 = sadd.s32 1, %s2936_s14  ;;  %s3832_s5 = smov (%p34_p4, %s3830_s5), 0 }
  0x5c   : > { %3798 = sst [smem:[#allocation17_spill]] %s3832_s5  ;;  %p3159_p13 = por %p51_p6, %p50_p1 }
  0x5d   : > { %p2576_p10 = scmp.lt.s32.totalorder %s2968_s22, 4  ;;  %s2092_s4 = sshll.u32 %s3832_s5, 1 }
  0x5e   : > { %s108_s9 = ssub.s32 %s2964_s21, %s3832_s5  ;;  %s39_s12 = sadd.s32 %s2092_s4, %s3828_s10 }
  0x5f   : > { %s110_s28 = sor.u32 %s109_s7, %s108_s9  ;;  %s40_s11 = ssub.s32 %s37_s23, %s39_s12 }
  0x60   : > { %p111_p11 = scmp.eq.s32.totalorder %s110_s28, 0  ;;  %p41_p0 = scmp.eq.s32.totalorder %s40_s11, 0 }
  0x61   : > { %s174_s6 = sand.u32 1, %s2948_s17   ;;  %s2545_s20 = smul.u32 1920, %s37_s23 }
  0x62   : > { %s3170_s8 = scalar_select %p111_p11, %s2936_s14, %s113_s24  }
  0x63   : > { %s3173_s1 = scalar_select %p41_p0, %s2948_s17, %s43_s15  }
  0x64   : > { %s2544_s2 = smul.u32 120, %s174_s6  ;;  %p3179_p3 = pnand %p2576_p10, %p3159_p13 }
  0x65   : > { %s3186_s7 = scalar_lea.hbm %s3765_s0, %s2545_s20  ;;  %s3190_s23 = scalar_lea.sflag [#allocation4], %s174_s6 }
  0x66   : > { %s178_s15 = scalar_lea.vmem [#allocation3], %s2544_s2  ;;  %s2812_s30 = scalar_lea.hbm %s3186_s7, 1920 }
  0x67   : > { %s187_s24 = sshll.u32 %s178_s15, 4  ;;  %p2813_p5 = scmp.ne.s32.totalorder %s3186_s7, %s2812_s30  ;;  %s3188_s24 = int_to_ptr.vmem [resolvable:$true] %s187_s24 }
  0x68   : > { %p2814_p7 = pneg %p3179_p3  ;;  %s2817_s5 = scalar_lea.hbm %s3765_s0, 7680 }
  0x69   : > { %p2818_p12 = scmp.lt.u32.totalorder %s3186_s7, %s3765_s0  ;;  %p2819_p2 = scmp.lt.u32.totalorder %s2817_s5, %s2812_s30 }
  0x6a   : > { %p2815_p8 = pnand %p2814_p7, %p2813_p5  ;;  %p2821_p4 = scmp.lt.u32.totalorder %s2812_s30, %s3186_s7 }
  0x6b   : > { %p2820_p1 = por %p2819_p2, %p2818_p12 }
  0x6c   : > { %p2816_p9 = pneg %p2815_p8 }
  0x6d   : > { %p2822_p6 = por %p2821_p4, %p2820_p1 }
  0x6f   : > { %p2823_p13 = pnand %p2822_p6, %p2816_p9 }
  0x71   : > { %2826 = shalt.err (!%p2823_p13)
}
  0x72   : > { %s2827_s2 = scalar_lea.vmem %s3188_s24, 1920  ;;  %s2974_s6 = smov [#allocation3]  }
  0x73   : > { %p2828_p10 = scmp.ne.s32.totalorder %s3188_s24, %s2827_s2  ;;  %s2832_s12 = sshll.u32 %s2974_s6, 4  ;;  %s2833_s12 = int_to_ptr.vmem [resolvable:$false] %s2832_s12 }
  0x74   : > { %s2834_s28 = scalar_lea.vmem %s2833_s12, 3840  ;;  %p2835_p5 = scmp.lt.s32.totalorder %s3188_s24, %s2833_s12 }
  0x75   : > { %p2830_p11 = pnand %p2828_p10, %p2814_p7  ;;  %p2836_p8 = scmp.lt.s32.totalorder %s2834_s28, %s2827_s2 }
  0x77   : > { %p2831_p0 = pneg %p2830_p11  ;;  %p2837_p12 = por %p2836_p8, %p2835_p5 }
  0x79   : > { %p2838_p2 = pnand %p2837_p12, %p2831_p0 }
  0x7b   : > { %2841 = shalt.err (!%p2838_p2)
}
  0x7c   : > { %s3801_s11 = smov 4   ;;  %s3802_s15 = smov 64  }
  0x7d   : > { %2569 = dma.hbm_to_vmem [thread:$0]  (!%p3179_p3), %s3186_s7, 1920, %s3188_s24, %s3190_s23, %s3802_s15, %s3802_s15, %s3801_s11  }
  0x7e   : > { %p3803_p7 = scmp.ne.s32.totalorder %s3794_s29, 0 }
  0x7f   : > { %s201_s30 = sand.u32 (!%p3803_p7), 1, %s2944_s16   ;;  %p3804_p9 = scmp.ne.s32.totalorder (!%p3803_p7), %s3789_s26, 0 }
  0x80   : > { %199 = sbr.rel (%p3803_p7) target bundleno = 542 (0x21e), region = 32  ;;  %s202_s27 = scalar_lea.sflag (!%p3803_p7), [#allocation4], %s201_s30 }
  0x81   : > { %s2546_s20 = smul.u32 (!%p3803_p7), 120, %s201_s30 }
  0x83   : > { %s3224_s5 = scalar_lea.vmem (!%p3803_p7), [#allocation3], %s2546_s20 }
  0x87   : > { %2915 = dma.done.wait (%p3804_p9), %s202_s27, 1920  }
  0x88   : > { %2917 = vsyncadd (%p3804_p9), %s202_s27, 4294965376  ;;  %p3805_p1 = scmp.ne.s32.totalorder %s3788_s25, 0 }
  0x8a   : > { %2919 = dma.done.wait (%p3805_p1), [#allocation7], 9232  }
  0x8b   : > { %2921 = vsyncadd (%p3805_p1), [#allocation7], 4294958064  ;;  %v2674_v0 = vld [vmem:[#allocation6 + $0x40] sm:$0xff]   ;;  %v2678_v4 = vld [vmem:[#allocation6 + $0x48] sm:$0xff]   ;;  %vm326_vm0 = vsmask.f32 3328 }
  0x8c   : > { %v2675_v1 = vld [vmem:[#allocation6 + $0xc0] sm:$0xff]   ;;  %2224 = vmatprep.subr.bf16.mxu0 %v2674_v0  ;;  %v2679_v5 = vld [vmem:[#allocation6 + $0xc8] sm:$0xff]   ;;  %v2682_v8 = vld [vmem:[#allocation6 + $0x50] sm:$0xff]   ;;  %vm327_vm1 = vsmask.f32 7440  ;;  %vm569_vm2 = vcmask 1042432  }
  0x8d   : > { %v2676_v2 = vld [vmem:[#allocation6] sm:$0xff]   ;;  %2288 = vmatprep.subr.bf16.mxu1 %v2675_v1  ;;  %v2680_v6 = vld [vmem:[#allocation6 + $0x8] sm:$0xff]   ;;  %v2683_v9 = vld [vmem:[#allocation6 + $0xd0] sm:$0xff]   ;;  %vm570_vm3 = vcmask 1046532   ;;  %s233_s3 = sand.u32 1, %s2932_s13   ;;  %s2223_s26 = sshll.u32 %s2952_s18, 4 }
  0x8e   : > { %v2677_v3 = vld [vmem:[#allocation6 + $0x80] sm:$0xff]   ;;  %2225 = vmatpush3.bf16.msra.mxu0 %v2676_v2  ;;  %v2681_v7 = vld [vmem:[#allocation6 + $0x88] sm:$0xff]   ;;  %v2684_v10 = vld [vmem:[#allocation6 + $0x10] sm:$0xff]   ;;  %s2102_s25 = sshll.u32 %s233_s3, 7  ;;  %s2219_s29 = sshll.u32 %s2956_s19, 5 }
  0x8f   : > { %2289 = vmatpush3.bf16.msra.mxu1 %v2677_v3  ;;  %2226 = vmatprep.subr.bf16.mxu0 %v2678_v4  ;;  %v2685_v11 = vld [vmem:[#allocation6 + $0x90] sm:$0xff]   ;;  %v2686_v12 = vld [vmem:[#allocation6 + $0x58] sm:$0xff]   ;;  %v2690_v16 = vld [vmem:[#allocation6 + $0x60] sm:$0xff]   ;;  %s3668_s7 = scalar_lea.vmem [#allocation9], %s2102_s25  ;;  %s1978_s18 = sadd.s32 %s2223_s26, %s2219_s29 }
  0x90   : > { %2290 = vmatprep.subr.bf16.mxu1 %v2679_v5  ;;  %v2687_v13 = vld [vmem:[#allocation6 + $0xd8] sm:$0xff]   ;;  %v2691_v17 = vld [vmem:[#allocation6 + $0xe0] sm:$0xff]   ;;  %v2694_v20 = vld [vmem:[#allocation6 + $0x68] sm:$0xff]   ;;  %s2220_s19 = sshll.u32 %s1978_s18, 7  ;;  %s1981_s24 = sshll.u32 %s3668_s7, 4  ;;  %s3692_s24 = int_to_ptr.vmem [resolvable:$true] %s1981_s24 }
  0x91   : > { %v2688_v14 = vld [vmem:[#allocation6 + $0x18] sm:$0xff]   ;;  %v2692_v18 = vld [vmem:[#allocation6 + $0x20] sm:$0xff]   ;;  %v2695_v21 = vld [vmem:[#allocation6 + $0xe8] sm:$0xff]   ;;  %s3810_s23 = sld [smem:[#allocation15_spill]]  ;;  %s3811_s2 = sld [smem:[#allocation20_spill]] }
  0x92   : > { %2227 = vmatpush3.bf16.msra.mxu0 %v2680_v6  ;;  %v2689_v15 = vld [vmem:[#allocation6 + $0x98] sm:$0xff]   ;;  %v2693_v19 = vld [vmem:[#allocation6 + $0xa0] sm:$0xff]   ;;  %v2696_v22 = vld [vmem:[#allocation6 + $0x28] sm:$0xff]   ;;  %s3704_s12 = scalar_lea.sflag [#allocation5], %s233_s3  ;;  %s2842_s28 = scalar_lea.vmem %s3692_s24, 2048 }
  0x93   : > { %2291 = vmatpush3.bf16.msra.mxu1 %v2681_v7  ;;  %2228 = vmatprep.subr.bf16.mxu0 %v2682_v8  ;;  %v2697_v23 = vld [vmem:[#allocation6 + $0xa8] sm:$0xff]   ;;  %v2698_v24 = vld [vmem:[#allocation6 + $0x70] sm:$0xff]   ;;  %v2702_v28 = vld [vmem:[#allocation6 + $0x78] sm:$0xff]   ;;  %p2843_p3 = scmp.ne.s32.totalorder %s3692_s24, %s2842_s28  ;;  %s2975_s11 = smov [#allocation9]  }
  0x94   : > { %2292 = vmatprep.subr.bf16.mxu1 %v2683_v9  ;;  %v2699_v25 = vld [vmem:[#allocation6 + $0xf0] sm:$0xff]   ;;  %v2703_v29 = vld [vmem:[#allocation6 + $0xf8] sm:$0xff]   ;;  %v2708_v52 = vld [vmem:[#allocation6 + $0x140] sm:$0xff]   ;;  %s2846_s15 = sshll.u32 %s2975_s11, 4  ;;  %s2847_s15 = int_to_ptr.vmem [resolvable:$false] %s2846_s15 }
  0x95   : > { %v2700_v26 = vld [vmem:[#allocation6 + $0x30] sm:$0xff]   ;;  %v2704_v30 = vld [vmem:[#allocation6 + $0x38] sm:$0xff]   ;;  %vm3260_vm4 = vmor %vm569_vm2, %vm570_vm3  ;;  %s2848_s30 = scalar_lea.vmem %s2847_s15, 4096  ;;  %p2849_p10 = scmp.lt.s32.totalorder %s3692_s24, %s2847_s15 }
  0x96   : > { %2229 = vmatpush3.bf16.msra.mxu0 %v2684_v10  ;;  %v2701_v27 = vld [vmem:[#allocation6 + $0xb0] sm:$0xff]   ;;  %v2705_v31 = vld [vmem:[#allocation6 + $0xb8] sm:$0xff]   ;;  %vm3266_vm5 = vmor %vm326_vm0, %vm327_vm1  ;;  %p2850_p11 = scmp.lt.s32.totalorder %s2848_s30, %s2842_s28 }
  0x97   : > { %2293 = vmatpush3.bf16.msra.mxu1 %v2685_v11  ;;  %2230 = vmatprep.subr.bf16.mxu0 %v2686_v12  ;;  %v3235_v32 = vld [vmem:[%s3224_s5] sm:$0xf]  ;;  %v3238_v33 = vld [vmem:[%s3224_s5 + $0x4] sm:$0xf]  ;;  %v242_v34 = vld [vmem:[%s3224_s5 + $0x8] sm:$0x1]  ;;  %s3690_s6 = scalar_lea.hbm %s3811_s2, %s2220_s19 }
  0x98   : > { %2294 = vmatprep.subr.bf16.mxu1 %v2687_v13  ;;  %v330_v35 = vshrl.u32 %v3235_v32, 16  ;;  %v333_v36 = vshll.u32 %v3235_v32, 16  ;;  %v339_v37 = vshll.u32 %v3238_v33, 16  ;;  %v343_v38 = vshrl.u32 %v3238_v33, 16  ;;  %v3246_v39 = vld [vmem:[%s3224_s5 + $0xc] sm:$0xf]  ;;  %p2851_p0 = por %p2850_p11, %p2849_p10 }
  0x99   : > { %v349_v40 = vshll.u32 %v242_v34, 16  ;;  %v3249_v41 = vld [vmem:[%s3224_s5 + $0x10] sm:$0xf]  ;;  %v354_v42 = vshrl.u32 %v3246_v39, 16  ;;  %v357_v43 = vshll.u32 %v3246_v39, 16  ;;  %v577_v59 = vrot.slane %v242_v34, 5 }
  0x9a   : > { %2231 = vmatpush3.bf16.msra.mxu0 %v2688_v14  ;;  %v332_v44 = vrot.slane %v330_v35, 4  ;;  %v335_v45 = vrot.slane %v333_v36, 5  ;;  %v341_v46 = vrot.slane %v339_v37, 5  ;;  %v345_v47 = vrot.slane %v343_v38, 4  ;;  %v2709_v62 = vld [vmem:[#allocation6 + $0x1c0] sm:$0xff]   ;;  %v2716_v35 = vld [vmem:[#allocation6 + $0x188] sm:$0xff]  }
  0x9b   : > { %2295 = vmatpush3.bf16.msra.mxu1 %v2689_v15  ;;  %2232 = vmatprep.subr.bf16.mxu0 %v2690_v16  ;;  %v351_v48 = vrot.slane %v349_v40, 5  ;;  %v3255_v49 = vcombine.low %v3246_v39, %v3249_v41  ;;  %v356_v50 = vrot.slane %v354_v42, 4  ;;  %v359_v51 = vrot.slane %v357_v43, 5  ;;  %v2710_v6 = vld [vmem:[#allocation6 + $0x100] sm:$0xff]   ;;  %v248_v37 = vld [vmem:[%s3224_s5 + $0x20] sm:$0x1] }
  0x9c   : > { %2296 = vmatprep.subr.bf16.mxu1 %v2691_v17  ;;  %v336_v53 = vor.u32 %v335_v45, %v332_v44  ;;  %v346_v54 = vor.u32 %v345_v47, %v341_v46  ;;  %v363_v55 = vshll.u32 %v3249_v41, 16  ;;  %v367_v56 = vshrl.u32 %v3249_v41, 16  ;;  %v2711_v7 = vld [vmem:[#allocation6 + $0x180] sm:$0xff]   ;;  %v3308_v44 = vld [vmem:[%s3224_s5 + $0x24] sm:$0xf]  ;;  %p3812_p4 = scmp.ne.s32.totalorder %s3810_s23, 0 }
  0x9d   : > { %1592 = vmatprep.mubr.bf16.mxu1 %v3255_v49  ;;  %v2119_v60 = vrot.slane %v3235_v32, 9  ;;  %v574_v61 = vrot.slane %v3238_v33, 5  ;;  %v360_v63 = vor.u32 %v359_v51, %v356_v50  ;;  %v2103_v3 = vcombine.low %v3235_v32, %v3238_v33  ;;  %v245_v10 = vld [vmem:[%s3224_s5 + $0x14] sm:$0x1]  ;;  %v3283_v13 = vld [vmem:[%s3224_s5 + $0x18] sm:$0xf] }
  0x9e   : > { %2233 = vmatpush3.bf16.msra.mxu0 %v2692_v18  ;;  %v337_v0 = vrot.slane %v336_v53, 4  ;;  %v347_v1 = vrot.slane %v346_v54, 4  ;;  %v369_v2 = vrot.slane %v367_v56, 4  ;;  %v365_v12 = vrot.slane %v363_v55, 5  ;;  %v247_v17 = vld [vmem:[%s3224_s5 + $0x1c] sm:$0xf]  ;;  %p2844_p6 = pnand %p2843_p3, %p3812_p4 }
  0x9f   : > { %2297 = vmatpush3.bf16.msra.mxu1 %v2693_v19  ;;  %2234 = vmatprep.subr.bf16.mxu0 %v2694_v20  ;;  %v575_v4 = vsel %vm3260_vm4, %v2119_v60, %v574_v61  ;;  %v576_v5 = vrot.slane %v574_v61, 4  ;;  %v361_v11 = vrot.slane %v360_v63, 4  ;;  %v373_v16 = vshll.u32 %v245_v10, 16  ;;  %v2715_v32 = vld [vmem:[#allocation6 + $0x108] sm:$0xff]   ;;  %v3311_v45 = vld [vmem:[%s3224_s5 + $0x28] sm:$0xf] }
  0xa0   : > { %2298 = vmatprep.subr.bf16.mxu1 %v2695_v21  ;;  %v342_v8 = vsel %vm3266_vm5, %v337_v0, %v341_v46  ;;  %v352_v9 = vsel %vm3266_vm5, %v347_v1, %v351_v48  ;;  %v2120_v18 = vrot.slane %v3246_v39, 9  ;;  %v370_v20 = vor.u32 %v369_v2, %v365_v12  ;;  %v2718_v51 = vld [vmem:[#allocation6 + $0x150] sm:$0xff]   ;;  %p2845_p13 = pneg %p2844_p6 }
  0xa1   : > { %v2111_v14 = vcombine.low %v342_v8, %v352_v9  ;;  %v578_v15 = vsel %vm3260_vm4, %v576_v5, %v577_v59  ;;  %v3290_v21 = vcombine.low %v3283_v13, %v247_v17  ;;  %v387_v42 = vshll.u32 %v247_v17, 16  ;;  %v2719_v0 = vld [vmem:[#allocation6 + $0x1d0] sm:$0xff]  }
  0xa2   : > { %2235 = vmatpush3.bf16.msra.mxu0 %v2696_v22  ;;  %v2127_v19 = vcombine.low %v575_v4, %v578_v15  ;;  %v378_v22 = vshrl.u32 %v3283_v13, 16  ;;  %v397_v48 = vshll.u32 %v248_v37, 16  ;;  %v3317_v50 = vcombine.low %v3308_v44, %v3311_v45  ;;  %p2852_p5 = pnand %p2851_p0, %p2845_p13 }
  0xa3   : > { %2299 = vmatpush3.bf16.msra.mxu1 %v2697_v23  ;;  %2236 = vmatprep.subr.bf16.mxu0 %v2698_v24  ;;  %v2713_v23 = vld [vmem:[#allocation6 + $0x148] sm:$0xff]   ;;  %v375_v24 = vrot.slane %v373_v16, 5  ;;  %v402_v53 = vshrl.u32 %v3308_v44, 16  ;;  %v405_v54 = vshll.u32 %v3308_v44, 16  ;;  %v415_v55 = vshrl.u32 %v3311_v45, 16 }
  0xa4   : > { %2300 = vmatprep.subr.bf16.mxu1 %v2699_v25  ;;  %1495 = vmatprep.mubr.bf16.mxu0 %v2111_v14  ;;  %v381_v25 = vshll.u32 %v3283_v13, 16  ;;  %v380_v38 = vrot.slane %v378_v22, 4  ;;  %v399_v59 = vrot.slane %v397_v48, 5  ;;  %v2121_v60 = vrot.slane %v3283_v13, 9  ;;  %v3336_v13 = vld [vmem:[%s3224_s5 + $0x30] sm:$0xf] }
  0xa5   : > { %v588_v61 = vrot.slane %v247_v17, 5  ;;  %v591_v63 = vrot.slane %v248_v37, 5  ;;  %v404_v8 = vrot.slane %v402_v53, 4  ;;  %v2723_v14 = vld [vmem:[#allocation6 + $0x158] sm:$0xff]   ;;  %v2123_v48 = vrot.slane %v3336_v13, 9 }
  0xa6   : > { %2237 = vmatpush3.bf16.msra.mxu0 %v2700_v26  ;;  %v391_v26 = vshrl.u32 %v247_v17, 16  ;;  %v383_v39 = vrot.slane %v381_v25, 5 }
  0xa7   : > { %2301 = vmatpush3.bf16.msra.mxu1 %v2701_v27  ;;  %2238 = vmatprep.subr.bf16.mxu0 %v2702_v28  ;;  %v581_v27 = vrot.slane %v3249_v41, 5  ;;  %v366_v28 = vsel %vm3266_vm5, %v361_v11, %v365_v12  ;;  %v589_v1 = vsel %vm3260_vm4, %v2121_v60, %v588_v61  ;;  %v590_v2 = vrot.slane %v588_v61, 4 }
  0xa8   : > { %2302 = vmatprep.subr.bf16.mxu1 %v2703_v29  ;;  %v371_v29 = vrot.slane %v370_v20, 4  ;;  %v393_v43 = vrot.slane %v391_v26, 4  ;;  %v384_v47 = vor.u32 %v383_v39, %v380_v38  ;;  %v417_v11 = vrot.slane %v415_v55, 4  ;;  %v2724_v20 = vld [vmem:[#allocation6 + $0x1d8] sm:$0xff]  }
  0xa9   : > { %v582_v33 = vsel %vm3260_vm4, %v2120_v18, %v581_v27  ;;  %v583_v34 = vrot.slane %v581_v27, 4  ;;  %v592_v9 = vsel %vm3260_vm4, %v590_v2, %v591_v63  ;;  %v3343_v18 = vld [vmem:[%s3224_s5 + $0x34] sm:$0xf]  ;;  %v429_v27 = vshll.u32 %v3336_v13, 16 }
  0xaa   : > { %2239 = vmatpush3.bf16.msra.mxu0 %v2704_v30  ;;  %v584_v30 = vrot.slane %v245_v10, 5  ;;  %v376_v36 = vsel %vm3266_vm5, %v371_v29, %v375_v24  ;;  %v385_v56 = vrot.slane %v384_v47, 4  ;;  %v411_v10 = vshll.u32 %v3311_v45, 16  ;;  %v2726_v39 = vld [vmem:[#allocation6 + $0x198] sm:$0xff]   ;;  %v3367_v47 = vld [vmem:[%s3224_s5 + $0x3c] sm:$0xf] }
  0xab   : > { %2303 = vmatpush3.bf16.msra.mxu1 %v2705_v31  ;;  %2352 = vmatprep.subr.bf16.mxu0 %v2708_v52  ;;  %v2714_v31 = vld [vmem:[#allocation6 + $0x1c8] sm:$0xff]   ;;  %v3303_v40 = vcombine.low %v366_v28, %v376_v36  ;;  %v389_v52 = vrot.slane %v387_v42, 5  ;;  %v3340_v16 = vcombine.low %v589_v1, %v592_v9  ;;  %v3350_v25 = vcombine.low %v3336_v13, %v3343_v18  ;;  %v2729_v2 = vld [vmem:[#allocation6 + $0x1e0] sm:$0xff]  }
  0xac   : > { %2416 = vmatprep.subr.bf16.mxu1 %v2709_v62  ;;  %v585_v41 = vsel %vm3260_vm4, %v583_v34, %v584_v30  ;;  %v439_v28 = vshrl.u32 %v3343_v18, 16  ;;  %v2122_v29 = vrot.slane %v3308_v44, 9  ;;  %v2725_v34 = vld [vmem:[#allocation6 + $0x118] sm:$0xff]   ;;  %v431_v42 = vrot.slane %v429_v27, 5 }
  0xad   : > { %1496 = vmatmul.mubr.bf16.vlgmr.msra.gmra.mrb[0].mxu0 %v2103_v3  ;;  %v3313_v46 = vcombine.low %v582_v33, %v585_v41  ;;  %v394_v62 = vor.u32 %v393_v43, %v389_v52  ;;  %v2720_v3 = vld [vmem:[#allocation6 + $0x110] sm:$0xff]   ;;  %v390_v4 = vsel %vm3266_vm5, %v385_v56, %v389_v52  ;;  %v254_v41 = vld [vmem:[%s3224_s5 + $0x38] sm:$0x1]  ;;  %v435_v43 = vshll.u32 %v3343_v18, 16 }
  0xae   : > { %1593 = vmatmul.mubr.bf16.vlgmr.msra.gmra.mrb[0].mxu1 %v2127_v19  ;;  %2353 = vmatpush3.bf16.msra.mxu0 %v2710_v6  ;;  %v2721_v6 = vld [vmem:[#allocation6 + $0x190] sm:$0xff]   ;;  %v426_v19 = vshrl.u32 %v3336_v13, 16  ;;  %v441_v44 = vrot.slane %v439_v28, 4  ;;  %v450_v55 = vshrl.u32 %v3367_v47, 16  ;;  %v2728_v56 = vld [vmem:[#allocation6 + $0x160] sm:$0xff]  }
  0xaf   : > { %2417 = vmatpush3.bf16.msra.mxu1 %v2711_v7  ;;  %1600 = vmatprep.mubr.bf16.mxu1 %v3290_v21  ;;  %v395_v5 = vrot.slane %v394_v62, 4  ;;  %v251_v7 = vld [vmem:[%s3224_s5 + $0x2c] sm:$0x1]  ;;  %v437_v60 = vrot.slane %v435_v43, 5  ;;  %v257_v13 = vld [vmem:[%s3224_s5 + $0x44] sm:$0x1] }
  0xb0   : > { %2354 = vmatprep.subr.bf16.mxu0 %v2713_v23  ;;  %2418 = vmatprep.subr.bf16.mxu1 %v2714_v31  ;;  %v421_v12 = vshll.u32 %v251_v7, 16  ;;  %v413_v23 = vrot.slane %v411_v10, 5  ;;  %v595_v31 = vrot.slane %v3311_v45, 5  ;;  %v445_v45 = vshll.u32 %v254_v41, 16  ;;  %v3408_v27 = vld [vmem:[%s3224_s5 + $0x4c] sm:$0xf] }
  0xb1   : > { %1503 = vmatprep.mubr.bf16.mxu0 %v3303_v40  ;;  %v400_v15 = vsel %vm3266_vm5, %v395_v5, %v399_v59  ;;  %v602_v5 = vrot.slane %v3343_v18, 5  ;;  %v469_v18 = vshll.u32 %v257_v13, 16  ;;  %v2735_v43 = vld [vmem:[#allocation6 + $0x128] sm:$0xff]  }
  0xb2   : > { %2355 = vmatpush3.bf16.msra.mxu0 %v2715_v32  ;;  %v3346_v22 = vcombine.low %v390_v4, %v400_v15  ;;  %v423_v24 = vrot.slane %v421_v12, 5  ;;  %v418_v30 = vor.u32 %v417_v11, %v413_v23  ;;  %v598_v32 = vrot.slane %v251_v7, 5  ;;  %v2731_v12 = vld [vmem:[#allocation6 + $0x1a0] sm:$0xff]  }
  0xb3   : > { %2419 = vmatpush3.bf16.msra.mxu1 %v2716_v35  ;;  %2356 = vmatprep.subr.bf16.mxu0 %v2718_v51  ;;  %v428_v35 = vrot.slane %v426_v19, 4  ;;  %v596_v37 = vsel %vm3260_vm4, %v2122_v29, %v595_v31  ;;  %v597_v38 = vrot.slane %v595_v31, 4  ;;  %v447_v61 = vrot.slane %v445_v45, 5  ;;  %v3399_v19 = vld [vmem:[%s3224_s5 + $0x48] sm:$0xf]  ;;  %v2733_v29 = vld [vmem:[#allocation6 + $0x168] sm:$0xff]  }
  0xb4   : > { %2420 = vmatprep.subr.bf16.mxu1 %v2719_v0  ;;  %v419_v36 = vrot.slane %v418_v30, 4  ;;  %v453_v0 = vshll.u32 %v3367_v47, 16  ;;  %v603_v10 = vsel %vm3260_vm4, %v2123_v48, %v602_v5  ;;  %v604_v11 = vrot.slane %v602_v5, 4  ;;  %v2738_v5 = vld [vmem:[#allocation6 + $0x170] sm:$0xff]  }
  0xb5   : > { %1504 = vmatmul.mubr.bf16.gmra.mrb[4].mxu0 %v3255_v49  ;;  %v407_v49 = vrot.slane %v405_v54, 5  ;;  %v599_v52 = vsel %vm3260_vm4, %v597_v38, %v598_v32  ;;  %v432_v53 = vor.u32 %v431_v42, %v428_v35  ;;  %v3375_v54 = vld [vmem:[%s3224_s5 + $0x40] sm:$0xf]  ;;  %v474_v28 = vshrl.u32 %v3399_v19, 16 }
  0xb6   : > { %1601 = vmatmul.mubr.bf16.gmra.mrb[4].mxu1 %v3313_v46  ;;  %2357 = vmatpush3.bf16.msra.mxu0 %v2720_v3  ;;  %v424_v51 = vsel %vm3266_vm5, %v419_v36, %v423_v24  ;;  %v3380_v62 = vcombine.low %v596_v37, %v599_v52  ;;  %v463_v1 = vshrl.u32 %v3375_v54, 16  ;;  %v442_v3 = vor.u32 %v441_v44, %v437_v60  ;;  %v2734_v36 = vld [vmem:[#allocation6 + $0x1e8] sm:$0xff]   ;;  %v260_v52 = vld [vmem:[%s3224_s5 + $0x50] sm:$0x1] }
  0xb7   : > { %1608 = vmatprep.mubr.bf16.mxu1 %v3317_v50  ;;  %2421 = vmatpush3.bf16.msra.mxu1 %v2721_v6  ;;  %v408_v17 = vor.u32 %v407_v49, %v404_v8  ;;  %v433_v63 = vrot.slane %v432_v53, 4  ;;  %v3387_v4 = vcombine.low %v3367_v47, %v3375_v54  ;;  %v605_v6 = vrot.slane %v254_v41, 5  ;;  %v2730_v8 = vld [vmem:[#allocation6 + $0x120] sm:$0xff]  }
  0xb8   : > { %2358 = vmatprep.subr.bf16.mxu0 %v2723_v14  ;;  %2422 = vmatprep.subr.bf16.mxu1 %v2724_v20  ;;  %v452_v49 = vrot.slane %v450_v55, 4  ;;  %v443_v9 = vrot.slane %v442_v3, 4  ;;  %v455_v14 = vrot.slane %v453_v0, 5  ;;  %v459_v15 = vshll.u32 %v3375_v54, 16 }
  0xb9   : > { %v409_v26 = vrot.slane %v408_v17, 4  ;;  %1511 = vmatprep.mubr.bf16.mxu0 %v3346_v22  ;;  %v438_v7 = vsel %vm3266_vm5, %v433_v63, %v437_v60  ;;  %v465_v17 = vrot.slane %v463_v1, 4  ;;  %v2124_v20 = vrot.slane %v3367_v47, 9  ;;  %v3428_v60 = vld [vmem:[%s3224_s5 + $0x54] sm:$0xf] }
  0xba   : > { %2359 = vmatpush3.bf16.msra.mxu0 %v2725_v34  ;;  %v606_v24 = vsel %vm3260_vm4, %v604_v11, %v605_v6  ;;  %v461_v31 = vrot.slane %v459_v15, 5  ;;  %v471_v32 = vrot.slane %v469_v18, 5  ;;  %v477_v34 = vshll.u32 %v3399_v19, 16 }
  0xbb   : > { %v414_v33 = vsel %vm3266_vm5, %v409_v26, %v413_v23  ;;  %2423 = vmatpush3.bf16.msra.mxu1 %v2726_v39  ;;  %2360 = vmatprep.subr.bf16.mxu0 %v2728_v56  ;;  %v448_v23 = vsel %vm3266_vm5, %v443_v9, %v447_v61  ;;  %v456_v26 = vor.u32 %v455_v14, %v452_v49  ;;  %v487_v35 = vshrl.u32 %v3408_v27, 16 }
  0xbc   : > { %v3378_v59 = vcombine.low %v414_v33, %v424_v51  ;;  %2424 = vmatprep.subr.bf16.mxu1 %v2729_v2  ;;  %v3411_v30 = vcombine.low %v438_v7, %v448_v23  ;;  %v3416_v37 = vcombine.low %v603_v10, %v606_v24  ;;  %v466_v38 = vor.u32 %v465_v17, %v461_v31  ;;  %v2736_v51 = vld [vmem:[#allocation6 + $0x1a8] sm:$0xff]  }
  0xbd   : > { %1512 = vmatmul.mubr.bf16.gmra.mrb[8].mxu0 %v3290_v21  ;;  %v457_v33 = vrot.slane %v456_v26, 4  ;;  %v609_v39 = vrot.slane %v3375_v54, 5  ;;  %v612_v41 = vrot.slane %v257_v13, 5  ;;  %v3421_v42 = vcombine.low %v3399_v19, %v3408_v27  ;;  %v3438_v2 = vld [vmem:[%s3224_s5 + $0x58] sm:$0xf] }
  0xbe   : > { %1609 = vmatmul.mubr.bf16.gmra.mrb[8].mxu1 %v3340_v16  ;;  %1519 = vmatprep.mubr.bf16.mxu0 %v3378_v59  ;;  %v476_v44 = vrot.slane %v474_v28, 4  ;;  %v467_v47 = vrot.slane %v466_v38, 4  ;;  %v479_v53 = vrot.slane %v477_v34, 5  ;;  %v483_v54 = vshll.u32 %v3408_v27, 16  ;;  %v2741_v28 = vld [vmem:[#allocation6 + $0x1b0] sm:$0xff]  }
  0xbf   : > { %1616 = vmatprep.mubr.bf16.mxu1 %v3350_v25  ;;  %2361 = vmatpush3.bf16.msra.mxu0 %v2730_v8  ;;  %v462_v45 = vsel %vm3266_vm5, %v457_v33, %v461_v31  ;;  %v611_v48 = vrot.slane %v609_v39, 4  ;;  %v489_v55 = vrot.slane %v487_v35, 4  ;;  %v493_v56 = vshll.u32 %v260_v52, 16 }
  0xc0   : > { %2425 = vmatpush3.bf16.msra.mxu1 %v2731_v12  ;;  %2362 = vmatprep.subr.bf16.mxu0 %v2733_v29  ;;  %v2125_v61 = vrot.slane %v3399_v19, 9  ;;  %v472_v63 = vsel %vm3266_vm5, %v467_v47, %v471_v32  ;;  %v610_v0 = vsel %vm3260_vm4, %v2124_v20, %v609_v39  ;;  %v480_v1 = vor.u32 %v479_v53, %v476_v44  ;;  %v2739_v12 = vld [vmem:[#allocation6 + $0x1f0] sm:$0xff]   ;;  %v263_v29 = vld [vmem:[%s3224_s5 + $0x5c] sm:$0x1] }
  0xc1   : > { %2426 = vmatprep.subr.bf16.mxu1 %v2734_v36  ;;  %v498_v3 = vshrl.u32 %v3428_v60, 16  ;;  %v3441_v6 = vcombine.low %v462_v45, %v472_v63  ;;  %v613_v7 = vsel %vm3260_vm4, %v611_v48, %v612_v41  ;;  %v485_v8 = vrot.slane %v483_v54, 5  ;;  %v2740_v19 = vld [vmem:[#allocation6 + $0x130] sm:$0xff]   ;;  %v2743_v36 = vld [vmem:[#allocation6 + $0x178] sm:$0xff]  }
  0xc2   : > { %v495_v49 = vrot.slane %v493_v56, 5  ;;  %v481_v9 = vrot.slane %v480_v1, 4  ;;  %v501_v10 = vshll.u32 %v3428_v60, 16  ;;  %v511_v11 = vshrl.u32 %v3438_v2, 16  ;;  %v3467_v41 = vld [vmem:[%s3224_s5 + $0x60] sm:$0xf] }
  0xc3   : > { %2363 = vmatpush3.bf16.msra.mxu0 %v2735_v43  ;;  %v490_v13 = vor.u32 %v489_v55, %v485_v8  ;;  %v616_v14 = vrot.slane %v3408_v27, 5  ;;  %v619_v15 = vrot.slane %v260_v52, 5  ;;  %v3450_v17 = vcombine.low %v610_v0, %v613_v7  ;;  %v3476_v48 = vld [vmem:[%s3224_s5 + $0x64] sm:$0xf]  ;;  %v2745_v56 = vld [vmem:[#allocation6 + $0x138] sm:$0xff]  }
  0xc4   : > { %2427 = vmatpush3.bf16.msra.mxu1 %v2736_v51  ;;  %2364 = vmatprep.subr.bf16.mxu0 %v2738_v5  ;;  %v3454_v18 = vcombine.low %v3428_v60, %v3438_v2  ;;  %v500_v20 = vrot.slane %v498_v3, 4  ;;  %v486_v23 = vsel %vm3266_vm5, %v481_v9, %v485_v8  ;;  %v503_v31 = vrot.slane %v501_v10, 5  ;;  %v2744_v51 = vld [vmem:[#allocation6 + $0x1f8] sm:$0xff]   ;;  %v2747_v3 = vld [vmem:[#allocation6 + $0x200] sm:$0xff]   ;;  %v2748_v10 = vld [vmem:[#allocation6 + $0x208] sm:$0xff]  }
  0xc5   : > { %1520 = vmatmul.mubr.bf16.gmra.mrb[12].mxu0 %v3317_v50  ;;  %2428 = vmatprep.subr.bf16.mxu1 %v2739_v12  ;;  %v491_v24 = vrot.slane %v490_v13, 4  ;;  %v618_v26 = vrot.slane %v616_v14, 4  ;;  %v507_v27 = vshll.u32 %v3438_v2, 16  ;;  %v513_v32 = vrot.slane %v511_v11, 4  ;;  %v2746_v1 = vld [vmem:[#allocation6 + $0x1b8] sm:$0xff]   ;;  %v2749_v11 = vld [vmem:[#allocation6 + $0x210] sm:$0xff]  }
  0xc6   : > { %1617 = vmatmul.mubr.bf16.gmra.mrb[12].mxu1 %v3380_v62  ;;  %1527 = vmatprep.mubr.bf16.mxu0 %v3411_v30  ;;  %v517_v33 = vshll.u32 %v263_v29, 16  ;;  %v504_v35 = vor.u32 %v503_v31, %v500_v20  ;;  %v2126_v43 = vrot.slane %v3428_v60, 9  ;;  %v617_v44 = vsel %vm3260_vm4, %v2125_v61, %v616_v14  ;;  %v266_v20 = vld [vmem:[%s3224_s5 + $0x68] sm:$0x1] }
  0xc7   : > { %1624 = vmatprep.mubr.bf16.mxu1 %v3387_v4  ;;  %2365 = vmatpush3.bf16.msra.mxu0 %v2740_v19  ;;  %v496_v34 = vsel %vm3266_vm5, %v491_v24, %v495_v49  ;;  %v509_v39 = vrot.slane %v507_v27, 5  ;;  %v620_v45 = vsel %vm3260_vm4, %v618_v26, %v619_v15  ;;  %v623_v54 = vrot.slane %v3438_v2, 5  ;;  %v3527_v24 = vld [vmem:[%s3224_s5 + $0x70] sm:$0xf] }
  0xc8   : > { %2429 = vmatpush3.bf16.msra.mxu1 %v2741_v28  ;;  %v3464_v38 = vcombine.low %v486_v23, %v496_v34  ;;  %v505_v47 = vrot.slane %v504_v35, 4  ;;  %2366 = vmatprep.subr.bf16.mxu0 %v2743_v36  ;;  %v519_v53 = vrot.slane %v517_v33, 5  ;;  %v626_v55 = vrot.slane %v263_v29, 5  ;;  %v3524_v23 = vld [vmem:[%s3224_s5 + $0x6c] sm:$0xf] }
  0xc9   : > { %v514_v52 = vor.u32 %v513_v32, %v509_v39  ;;  %2430 = vmatprep.subr.bf16.mxu1 %v2744_v51  ;;  %v3480_v60 = vcombine.low %v617_v44, %v620_v45  ;;  %v625_v0 = vrot.slane %v623_v54, 4  ;;  %v3486_v5 = vcombine.low %v3467_v41, %v3476_v48  ;;  %v2755_v26 = vld [vmem:[#allocation6 + $0x238] sm:$0xff]  }
  0xca   : > { %v510_v61 = vsel %vm3266_vm5, %v505_v47, %v509_v39  ;;  %v624_v8 = vsel %vm3260_vm4, %v2126_v43, %v623_v54  ;;  %v696_v12 = vshrl.u32 %v3476_v48, 16  ;;  %v692_v13 = vshll.u32 %v3476_v48, 16  ;;  %v269_v45 = vld [vmem:[%s3224_s5 + $0x74] sm:$0x1] }
  0xcb   : > { %v515_v63 = vrot.slane %v514_v52, 4  ;;  %2367 = vmatpush3.bf16.msra.mxu0 %v2745_v56  ;;  %v627_v49 = vsel %vm3260_vm4, %v625_v0, %v626_v55  ;;  %v702_v31 = vshll.u32 %v266_v20, 16  ;;  %v753_v27 = vshrl.u32 %v3524_v23, 16 }
  0xcc   : > { %2431 = vmatpush3.bf16.msra.mxu1 %v2746_v1  ;;  %2496 = vmatprep.subr.bf16.mxu0 %v2747_v3  ;;  %v3500_v9 = vcombine.low %v624_v8, %v627_v49  ;;  %v694_v15 = vrot.slane %v692_v13, 5  ;;  %v698_v19 = vrot.slane %v696_v12, 4  ;;  %v756_v32 = vshll.u32 %v3524_v23, 16 }
  0xcd   : > { %1528 = vmatmul.mubr.bf16.gmra.mrb[16].mxu0 %v3350_v25  ;;  %v520_v2 = vsel %vm3266_vm5, %v515_v63, %v519_v53  ;;  %2528 = vmatprep.subr.bf16.mxu1 %v2747_v3  ;;  %v762_v33 = vshll.u32 %v3527_v24, 16  ;;  %v704_v35 = vrot.slane %v702_v31, 5  ;;  %v755_v36 = vrot.slane %v753_v27, 4 }
  0xce   : > { %1625 = vmatmul.mubr.bf16.gmra.mrb[16].mxu1 %v3416_v37  ;;  %1535 = vmatprep.mubr.bf16.mxu0 %v3441_v6  ;;  %v3490_v7 = vcombine.low %v510_v61, %v520_v2  ;;  %v699_v29 = vor.u32 %v698_v19, %v694_v15  ;;  %v758_v39 = vrot.slane %v756_v32, 5  ;;  %v721_v51 = vrot.slane %v3476_v48, 5 }
  0xcf   : > { %1632 = vmatprep.mubr.bf16.mxu1 %v3421_v42  ;;  %v764_v43 = vrot.slane %v762_v33, 5  ;;  %v772_v55 = vshll.u32 %v269_v45, 16  ;;  %v724_v61 = vrot.slane %v266_v20, 5  ;;  %v791_v58 = vrot.slane %v3527_v24, 5 }
  0xd0   : > { %v700_v34 = vrot.slane %v699_v29, 4  ;;  %v759_v53 = vor.u32 %v758_v39, %v755_v36 }
  0xd1   : > { %v774_v1 = vrot.slane %v772_v55, 5 }
  0xd2   : > { %v705_v52 = vsel %vm3266_vm5, %v700_v34, %v704_v35  ;;  %v760_v63 = vrot.slane %v759_v53, 4 }
  0xd5   : > { %1536 = vmatmul.mubr.bf16.gmra.mrb[20].mxu0 %v3387_v4 }
  0xd6   : > { %1633 = vmatmul.mubr.bf16.gmra.mrb[20].mxu1 %v3450_v17  ;;  %1543 = vmatprep.mubr.bf16.mxu0 %v3464_v38 }
  0xd7   : > { %1640 = vmatprep.mubr.bf16.mxu1 %v3454_v18 }
  0xdd   : > { %1544 = vmatmul.mubr.bf16.gmra.mrb[24].mxu0 %v3421_v42 }
  0xde   : > { %1641 = vmatmul.mubr.bf16.gmra.mrb[24].mxu1 %v3480_v60  ;;  %1551 = vmatprep.mubr.bf16.mxu0 %v3490_v7 }
  0xdf   : > { %1648 = vmatprep.mubr.bf16.mxu1 %v3486_v5 }
  0xe5   : > { %1552 = vmatmul.mubr.bf16.gmra.mrb[28].mxu0 %v3454_v18 }
  0xe6   : > { %1649 = vmatmul.mubr.bf16.gmra.mrb[28].mxu1 %v3500_v9  ;;  %1689 = vmatprep.mubr.bf16.mxu0 %v3313_v46  ;;  %v2750_v46 = vld [vmem:[#allocation6 + $0x218] sm:$0xff]  }
  0xe7   : > { %1786 = vmatprep.mubr.bf16.mxu1 %v3346_v22 }
  0xed   : > { %1690 = vmatmul.mubr.bf16.vlgmr.msra.gmra.mrb[32].mxu0 %v3303_v40  ;;  %v2752_v40 = vld [vmem:[#allocation6 + $0x228] sm:$0xff]  }
  0xee   : > { %1787 = vmatmul.mubr.bf16.vlgmr.msra.gmra.mrb[32].mxu1 %v3290_v21  ;;  %2497 = vmatpush3.bf16.msra.mxu0 %v2747_v3  ;;  %v2751_v21 = vld [vmem:[#allocation6 + $0x220] sm:$0xff]  }
  0xef   : > { %2536 = vmatpush3.bf16.msra.mxu1 %v2747_v3  ;;  %1697 = vmatprep.mubr.bf16.mxu0 %v3340_v16 }
  0xf0   : > { %1794 = vmatprep.mubr.bf16.mxu1 %v3378_v59  ;;  %2498 = vmatprep.subr.bf16.mxu0 %v2748_v10 }
  0xf1   : > { %2529 = vmatprep.subr.bf16.mxu1 %v2748_v10 }
  0xf2   : > { %2499 = vmatpush3.bf16.msra.mxu0 %v2748_v10 }
  0xf3   : > { %2537 = vmatpush3.bf16.msra.mxu1 %v2748_v10  ;;  %2500 = vmatprep.subr.bf16.mxu0 %v2749_v11  ;;  %v793_v10 = vrot.slane %v791_v58, 4 }
  0xf4   : > { %2530 = vmatprep.subr.bf16.mxu1 %v2749_v11 }
  0xf5   : > { %1698 = vmatmul.mubr.bf16.gmra.mrb[36].mxu0 %v3346_v22  ;;  %v686_v22 = vshll.u32 %v3467_v41, 16 }
  0xf6   : > { %1795 = vmatmul.mubr.bf16.gmra.mrb[36].mxu1 %v3317_v50  ;;  %1705 = vmatprep.mubr.bf16.mxu0 %v3380_v62  ;;  %v683_v50 = vshrl.u32 %v3467_v41, 16 }
  0xf7   : > { %1802 = vmatprep.mubr.bf16.mxu1 %v3411_v30  ;;  %2501 = vmatpush3.bf16.msra.mxu0 %v2749_v11  ;;  %v688_v14 = vrot.slane %v686_v22, 5 }
  0xf8   : > { %2538 = vmatpush3.bf16.msra.mxu1 %v2749_v11  ;;  %2502 = vmatprep.subr.bf16.mxu0 %v2750_v46  ;;  %v794_v11 = vrot.slane %v269_v45, 5 }
  0xf9   : > { %2531 = vmatprep.subr.bf16.mxu1 %v2750_v46 }
  0xfb   : > { %2503 = vmatpush3.bf16.msra.mxu0 %v2750_v46 }
  0xfc   : > { %2539 = vmatpush3.bf16.msra.mxu1 %v2750_v46  ;;  %2504 = vmatprep.subr.bf16.mxu0 %v2751_v21 }
  0xfd   : > { %2532 = vmatprep.subr.bf16.mxu1 %v2751_v21  ;;  %1706 = vmatmul.mubr.bf16.gmra.mrb[40].mxu0 %v3378_v59  ;;  %v685_v59 = vrot.slane %v683_v50, 4 }
  0xfe   : > { %1803 = vmatmul.mubr.bf16.gmra.mrb[40].mxu1 %v3350_v25  ;;  %1713 = vmatprep.mubr.bf16.mxu0 %v3416_v37  ;;  %v2753_v25 = vld [vmem:[#allocation6 + $0x230] sm:$0xff]  }
  0xff   : > { %1810 = vmatprep.mubr.bf16.mxu1 %v3441_v6  ;;  %2505 = vmatpush3.bf16.msra.mxu0 %v2751_v21  ;;  %v689_v28 = vor.u32 %v688_v14, %v685_v59 }
 0x100   : > { %2540 = vmatpush3.bf16.msra.mxu1 %v2751_v21  ;;  %2506 = vmatprep.subr.bf16.mxu0 %v2752_v40  ;;  %v3575_v21 = vld [vmem:[#allocation8] ss:$0 sm:$0xff] }
 0x101   : > { %2533 = vmatprep.subr.bf16.mxu1 %v2752_v40 }
 0x103   : > { %2507 = vmatpush3.bf16.msra.mxu0 %v2752_v40 }
 0x104   : > { %2541 = vmatpush3.bf16.msra.mxu1 %v2752_v40  ;;  %2508 = vmatprep.subr.bf16.mxu0 %v2753_v25 }
 0x105   : > { %2534 = vmatprep.subr.bf16.mxu1 %v2753_v25  ;;  %1714 = vmatmul.mubr.bf16.gmra.mrb[44].mxu0 %v3411_v30  ;;  %v766_v30 = vshrl.u32 %v3527_v24, 16 }
 0x106   : > { %1811 = vmatmul.mubr.bf16.gmra.mrb[44].mxu1 %v3387_v4  ;;  %1721 = vmatprep.mubr.bf16.mxu0 %v3450_v17  ;;  %v690_v4 = vrot.slane %v689_v28, 4 }
 0x107   : > { %1818 = vmatprep.mubr.bf16.mxu1 %v3464_v38  ;;  %2509 = vmatpush3.bf16.msra.mxu0 %v2753_v25  ;;  %v768_v44 = vrot.slane %v766_v30, 4 }
 0x108   : > { %2542 = vmatpush3.bf16.msra.mxu1 %v2753_v25  ;;  %2510 = vmatprep.subr.bf16.mxu0 %v2755_v26  ;;  %v695_v47 = vsel %vm3266_vm5, %v690_v4, %v694_v15 }
 0x109   : > { %2535 = vmatprep.subr.bf16.mxu1 %v2755_v26  ;;  %v769_v54 = vor.u32 %v768_v44, %v764_v43  ;;  %v2136_v56 = vcombine.low %v695_v47, %v705_v52 }
 0x10b   : > { %2511 = vmatpush3.bf16.msra.mxu0 %v2755_v26  ;;  %v770_v0 = vrot.slane %v769_v54, 4 }
 0x10c   : > { %2543 = vmatpush3.bf16.msra.mxu1 %v2755_v26 }
 0x10d   : > { %1722 = vmatmul.mubr.bf16.gmra.mrb[48].mxu0 %v3441_v6  ;;  %v2137_v6 = vrot.slane %v3467_v41, 9  ;;  %v765_v41 = vsel %vm3266_vm5, %v760_v63, %v764_v43  ;;  %v775_v2 = vsel %vm3266_vm5, %v770_v0, %v774_v1 }
 0x10e   : > { %1819 = vmatmul.mubr.bf16.gmra.mrb[48].mxu1 %v3421_v42  ;;  %1729 = vmatprep.mubr.bf16.mxu0 %v3480_v60  ;;  %v723_v42 = vrot.slane %v721_v51, 4  ;;  %v2140_v49 = vcombine.low %v765_v41, %v775_v2 }
 0x10f   : > { %1826 = vmatprep.mubr.bf16.mxu1 %v3490_v7  ;;  %v722_v48 = vsel %vm3260_vm4, %v2137_v6, %v721_v51 }
 0x110   : > { %v725_v3 = vsel %vm3260_vm4, %v723_v42, %v724_v61 }
 0x111   : > { %v2138_v8 = vcombine.low %v722_v48, %v725_v3 }
 0x115   : > { %1730 = vmatmul.mubr.bf16.gmra.mrb[52].mxu0 %v3464_v38  ;;  %v2141_v38 = vrot.slane %v3524_v23, 9 }
 0x116   : > { %1827 = vmatmul.mubr.bf16.gmra.mrb[52].mxu1 %v3454_v18  ;;  %1737 = vmatprep.mubr.bf16.mxu0 %v3500_v9  ;;  %v2139_v18 = vcombine.low %v3524_v23, %v3527_v24 }
 0x117   : > { %1834 = vmatprep.mubr.bf16.mxu1 %v2136_v56 }
 0x11d   : > { %1738 = vmatmul.mubr.bf16.gmra.mrb[56].mxu0 %v3490_v7 }
 0x11e   : > { %1835 = vmatmul.mubr.bf16.gmra.mrb[56].mxu1 %v3486_v5  ;;  %1745 = vmatprep.mubr.bf16.mxu0 %v2138_v8  ;;  %v792_v5 = vsel %vm3260_vm4, %v2141_v38, %v791_v58 }
 0x11f   : > { %1842 = vmatprep.mubr.bf16.mxu1 %v2140_v49 }
 0x125   : > { %1746 = vmatmul.mubr.bf16.gmra.mrb[60].mxu0 %v2136_v56 }
 0x126   : > { %1843 = vmatmul.mubr.bf16.gmra.mrb[60].mxu1 %v2139_v18  ;;  %2512 = vmatprep.mubr.bf16.mxu0 %v3340_v16  ;;  %v795_v16 = vsel %vm3260_vm4, %v793_v10, %v794_v11 }
 0x127   : > { %2520 = vmatprep.mubr.bf16.mxu1 %v3480_v60  ;;  %v2142_v60 = vcombine.low %v792_v5, %v795_v16 }
 0x12d   : > { %2513 = vmatmul.mubr.bf16.vlgmr.msra.gmra.mrb[64].mxu0 %v3380_v62 }
 0x12e   : > { %2521 = vmatmul.mubr.bf16.vlgmr.msra.gmra.mrb[64].mxu1 %v3500_v9  ;;  %2516 = vmatprep.mubr.bf16.mxu0 %v3416_v37 }
 0x12f   : > { %2524 = vmatprep.mubr.bf16.mxu1 %v2138_v8 }
 0x135   : > { %2517 = vmatmul.mubr.bf16.gmra.mrb[68].mxu0 %v3450_v17 }
 0x136   : > { %2525 = vmatmul.mubr.bf16.gmra.mrb[68].mxu1 %v2142_v60 }
 0x180   : > { %v2240_v7 = vpop.f32.mrb[0].mxu0 }
 0x181   : > { %v2304_v46 = vpop.f32.mrb[0].mxu1  ;;  %v2241_v62 = vpop.f32.mrb[1].mxu0 }
 0x182   : > { %v2305_v40 = vpop.f32.mrb[1].mxu1  ;;  %v2242_v9 = vadd.f32 %v2241_v62, %v2240_v7  ;;  %v2243_v37 = vpop.f32.mrb[2].mxu0 }
 0x183   : > { %v2306_v50 = vadd.f32 %v2305_v40, %v2304_v46  ;;  %v2307_v22 = vpop.f32.mrb[2].mxu1  ;;  %v2244_v12 = vpop.f32.mrb[3].mxu0 }
 0x184   : > { %v2308_v13 = vpop.f32.mrb[3].mxu1  ;;  %v1498_v25 = vadd.f32 %v2242_v9, %v3575_v21  ;;  %v2245_v57 = vadd.f32 %v2244_v12, %v2243_v37 }
 0x185   : > { %v2309_v59 = vadd.f32 %v2308_v13, %v2307_v22 }
 0x186   : > { %v3578_v14 = vadd.f32 %v2306_v50, %v1498_v25  ;;  %v1501_v17 = vadd.f32 %v2245_v57, %v3575_v21 }
 0x188   : > { %v3581_v15 = vadd.f32 %v2309_v59, %v1501_v17  ;;  %v2246_v19 = vpop.f32.mrb[4].mxu0 }
 0x189   : > { %v2310_v20 = vpop.f32.mrb[4].mxu1  ;;  %v2247_v23 = vpop.f32.mrb[5].mxu0 }
 0x18a   : > { %v2311_v24 = vpop.f32.mrb[5].mxu1  ;;  %v2248_v26 = vadd.f32 %v2247_v23, %v2246_v19  ;;  %v2249_v29 = vpop.f32.mrb[6].mxu0 }
 0x18b   : > { %v2312_v28 = vadd.f32 %v2311_v24, %v2310_v20  ;;  %v2313_v31 = vpop.f32.mrb[6].mxu1  ;;  %v2250_v27 = vpop.f32.mrb[7].mxu0 }
 0x18c   : > { %v2314_v32 = vpop.f32.mrb[7].mxu1  ;;  %v1506_v33 = vadd.f32 %v2248_v26, %v3575_v21  ;;  %v2251_v30 = vadd.f32 %v2250_v27, %v2249_v29 }
 0x18d   : > { %v2315_v4 = vadd.f32 %v2314_v32, %v2313_v31 }
 0x18e   : > { %v3584_v34 = vadd.f32 %v2312_v28, %v1506_v33  ;;  %v1509_v35 = vadd.f32 %v2251_v30, %v3575_v21 }
 0x190   : > { %v3587_v36 = vadd.f32 %v2315_v4, %v1509_v35  ;;  %v2252_v39 = vpop.f32.mrb[8].mxu0 }
 0x191   : > { %v2316_v43 = vpop.f32.mrb[8].mxu1  ;;  %v2253_v44 = vpop.f32.mrb[9].mxu0 }
 0x192   : > { %v2317_v45 = vpop.f32.mrb[9].mxu1  ;;  %v2254_v47 = vadd.f32 %v2253_v44, %v2252_v39  ;;  %v2255_v52 = vpop.f32.mrb[10].mxu0 }
 0x193   : > { %v2318_v51 = vadd.f32 %v2317_v45, %v2316_v43  ;;  %v2319_v53 = vpop.f32.mrb[10].mxu1  ;;  %v2256_v54 = vpop.f32.mrb[11].mxu0 }
 0x194   : > { %v2320_v55 = vpop.f32.mrb[11].mxu1  ;;  %v1514_v56 = vadd.f32 %v2254_v47, %v3575_v21  ;;  %v2257_v6 = vadd.f32 %v2256_v54, %v2255_v52 }
 0x195   : > { %v2321_v61 = vadd.f32 %v2320_v55, %v2319_v53 }
 0x196   : > { %v3590_v42 = vadd.f32 %v2318_v51, %v1514_v56  ;;  %v1517_v63 = vadd.f32 %v2257_v6, %v3575_v21 }
 0x198   : > { %v3593_v0 = vadd.f32 %v2321_v61, %v1517_v63  ;;  %v2258_v1 = vpop.f32.mrb[12].mxu0 }
 0x199   : > { %v2322_v48 = vpop.f32.mrb[12].mxu1  ;;  %v2259_v3 = vpop.f32.mrb[13].mxu0 }
 0x19a   : > { %v2323_v41 = vpop.f32.mrb[13].mxu1  ;;  %v2260_v2 = vadd.f32 %v2259_v3, %v2258_v1  ;;  %v2261_v49 = vpop.f32.mrb[14].mxu0 }
 0x19b   : > { %v2324_v8 = vadd.f32 %v2323_v41, %v2322_v48  ;;  %v2325_v18 = vpop.f32.mrb[14].mxu1  ;;  %v2262_v58 = vpop.f32.mrb[15].mxu0 }
 0x19c   : > { %v2326_v38 = vpop.f32.mrb[15].mxu1  ;;  %v1522_v10 = vadd.f32 %v2260_v2, %v3575_v21  ;;  %v2263_v11 = vadd.f32 %v2262_v58, %v2261_v49 }
 0x19d   : > { %v2327_v5 = vadd.f32 %v2326_v38, %v2325_v18 }
 0x19e   : > { %v3596_v16 = vadd.f32 %v2324_v8, %v1522_v10  ;;  %v1525_v60 = vadd.f32 %v2263_v11, %v3575_v21 }
 0x1a0   : > { %v3599_v7 = vadd.f32 %v2327_v5, %v1525_v60  ;;  %v2264_v46 = vpop.f32.mrb[16].mxu0 }
 0x1a1   : > { %v2328_v62 = vpop.f32.mrb[16].mxu1  ;;  %v2265_v40 = vpop.f32.mrb[17].mxu0 }
 0x1a2   : > { %v2329_v9 = vpop.f32.mrb[17].mxu1  ;;  %v2266_v50 = vadd.f32 %v2265_v40, %v2264_v46  ;;  %v2267_v22 = vpop.f32.mrb[18].mxu0 }
 0x1a3   : > { %v2330_v37 = vadd.f32 %v2329_v9, %v2328_v62  ;;  %v2331_v12 = vpop.f32.mrb[18].mxu1  ;;  %v2268_v13 = vpop.f32.mrb[19].mxu0 }
 0x1a4   : > { %v2332_v25 = vpop.f32.mrb[19].mxu1  ;;  %v1530_v57 = vadd.f32 %v2266_v50, %v3575_v21  ;;  %v2269_v59 = vadd.f32 %v2268_v13, %v2267_v22 }
 0x1a5   : > { %v2333_v17 = vadd.f32 %v2332_v25, %v2331_v12 }
 0x1a6   : > { %v3602_v19 = vadd.f32 %v2330_v37, %v1530_v57  ;;  %v1533_v20 = vadd.f32 %v2269_v59, %v3575_v21 }
 0x1a8   : > { %v3605_v23 = vadd.f32 %v2333_v17, %v1533_v20  ;;  %v2270_v24 = vpop.f32.mrb[20].mxu0 }
 0x1a9   : > { %v2334_v26 = vpop.f32.mrb[20].mxu1  ;;  %v2271_v28 = vpop.f32.mrb[21].mxu0 }
 0x1aa   : > { %v2335_v29 = vpop.f32.mrb[21].mxu1  ;;  %v2272_v31 = vadd.f32 %v2271_v28, %v2270_v24  ;;  %v2273_v32 = vpop.f32.mrb[22].mxu0 }
 0x1ab   : > { %v2336_v27 = vadd.f32 %v2335_v29, %v2334_v26  ;;  %v2337_v33 = vpop.f32.mrb[22].mxu1  ;;  %v2274_v30 = vpop.f32.mrb[23].mxu0 }
 0x1ac   : > { %v2338_v4 = vpop.f32.mrb[23].mxu1  ;;  %v1538_v35 = vadd.f32 %v2272_v31, %v3575_v21  ;;  %v2275_v39 = vadd.f32 %v2274_v30, %v2273_v32 }
 0x1ad   : > { %v2339_v43 = vadd.f32 %v2338_v4, %v2337_v33 }
 0x1ae   : > { %v3608_v44 = vadd.f32 %v2336_v27, %v1538_v35  ;;  %v1541_v45 = vadd.f32 %v2275_v39, %v3575_v21 }
 0x1b0   : > { %v3611_v47 = vadd.f32 %v2339_v43, %v1541_v45  ;;  %v2276_v51 = vpop.f32.mrb[24].mxu0 }
 0x1b1   : > { %v2340_v52 = vpop.f32.mrb[24].mxu1  ;;  %v2277_v53 = vpop.f32.mrb[25].mxu0 }
 0x1b2   : > { %v2341_v54 = vpop.f32.mrb[25].mxu1  ;;  %v2278_v55 = vadd.f32 %v2277_v53, %v2276_v51  ;;  %v2279_v6 = vpop.f32.mrb[26].mxu0 }
 0x1b3   : > { %v2342_v56 = vadd.f32 %v2341_v54, %v2340_v52  ;;  %v2343_v61 = vpop.f32.mrb[26].mxu1  ;;  %v2280_v63 = vpop.f32.mrb[27].mxu0 }
 0x1b4   : > { %v2344_v1 = vpop.f32.mrb[27].mxu1  ;;  %v1546_v48 = vadd.f32 %v2278_v55, %v3575_v21  ;;  %v2281_v3 = vadd.f32 %v2280_v63, %v2279_v6 }
 0x1b5   : > { %v2345_v41 = vadd.f32 %v2344_v1, %v2343_v61 }
 0x1b6   : > { %v3614_v2 = vadd.f32 %v2342_v56, %v1546_v48  ;;  %v1549_v8 = vadd.f32 %v2281_v3, %v3575_v21 }
 0x1b8   : > { %v3617_v49 = vadd.f32 %v2345_v41, %v1549_v8  ;;  %v2282_v18 = vpop.f32.mrb[28].mxu0 }
 0x1b9   : > { %v2346_v58 = vpop.f32.mrb[28].mxu1  ;;  %v2283_v38 = vpop.f32.mrb[29].mxu0 }
 0x1ba   : > { %v2347_v10 = vpop.f32.mrb[29].mxu1  ;;  %v2284_v11 = vadd.f32 %v2283_v38, %v2282_v18  ;;  %v2285_v60 = vpop.f32.mrb[30].mxu0 }
 0x1bb   : > { %v2348_v5 = vadd.f32 %v2347_v10, %v2346_v58  ;;  %v2349_v46 = vpop.f32.mrb[30].mxu1  ;;  %v2286_v62 = vpop.f32.mrb[31].mxu0 }
 0x1bc   : > { %v2350_v40 = vpop.f32.mrb[31].mxu1  ;;  %v1554_v9 = vadd.f32 %v2284_v11, %v3575_v21  ;;  %v2287_v50 = vadd.f32 %v2286_v62, %v2285_v60 }
 0x1bd   : > { %v2351_v37 = vadd.f32 %v2350_v40, %v2349_v46 }
 0x1be   : > { %v3620_v22 = vadd.f32 %v2348_v5, %v1554_v9  ;;  %v1557_v12 = vadd.f32 %v2287_v50, %v3575_v21 }
 0x1c0   : > { %v3623_v13 = vadd.f32 %v2351_v37, %v1557_v12  ;;  %v2368_v25 = vpop.f32.mrb[32].mxu0 }
 0x1c1   : > { %v2432_v57 = vpop.f32.mrb[32].mxu1  ;;  %v2369_v59 = vpop.f32.mrb[33].mxu0 }
 0x1c2   : > { %v2433_v17 = vpop.f32.mrb[33].mxu1  ;;  %v2370_v20 = vadd.f32 %v2369_v59, %v2368_v25  ;;  %v2371_v26 = vpop.f32.mrb[34].mxu0 }
 0x1c3   : > { %v2434_v24 = vadd.f32 %v2433_v17, %v2432_v57  ;;  %v2435_v28 = vpop.f32.mrb[34].mxu1  ;;  %v2372_v29 = vpop.f32.mrb[35].mxu0 }
 0x1c4   : > { %v2436_v31 = vpop.f32.mrb[35].mxu1  ;;  %v1692_v27 = vadd.f32 %v2370_v20, %v3578_v14  ;;  %v2373_v32 = vadd.f32 %v2372_v29, %v2371_v26 }
 0x1c5   : > { %v2437_v33 = vadd.f32 %v2436_v31, %v2435_v28 }
 0x1c6   : > { %v1695_v30 = vadd.f32 %v2373_v32, %v3581_v15  ;;  %v3627_v4 = vadd.f32 %v2434_v24, %v1692_v27 }
 0x1c8   : > { %v2374_v21 = vpop.f32.mrb[36].mxu0  ;;  %v3629_v39 = vadd.f32 %v2437_v33, %v1695_v30 }
 0x1c9   : > { %v2438_v35 = vpop.f32.mrb[36].mxu1  ;;  %v2375_v43 = vpop.f32.mrb[37].mxu0 }
 0x1ca   : > { %v2439_v45 = vpop.f32.mrb[37].mxu1  ;;  %v2376_v51 = vadd.f32 %v2375_v43, %v2374_v21  ;;  %v2377_v53 = vpop.f32.mrb[38].mxu0 }
 0x1cb   : > { %v2440_v52 = vadd.f32 %v2439_v45, %v2438_v35  ;;  %v2441_v54 = vpop.f32.mrb[38].mxu1  ;;  %v2378_v55 = vpop.f32.mrb[39].mxu0 }
 0x1cc   : > { %v2442_v56 = vpop.f32.mrb[39].mxu1  ;;  %v1700_v14 = vadd.f32 %v2376_v51, %v3584_v34  ;;  %v2379_v6 = vadd.f32 %v2378_v55, %v2377_v53 }
 0x1cd   : > { %v2443_v61 = vadd.f32 %v2442_v56, %v2441_v54 }
 0x1ce   : > { %v1703_v15 = vadd.f32 %v2379_v6, %v3587_v36  ;;  %v3633_v63 = vadd.f32 %v2440_v52, %v1700_v14 }
 0x1d0   : > { %v2380_v1 = vpop.f32.mrb[40].mxu0  ;;  %v3635_v3 = vadd.f32 %v2443_v61, %v1703_v15 }
 0x1d1   : > { %v2444_v48 = vpop.f32.mrb[40].mxu1  ;;  %v2381_v41 = vpop.f32.mrb[41].mxu0 }
 0x1d2   : > { %v2445_v8 = vpop.f32.mrb[41].mxu1  ;;  %v2382_v18 = vadd.f32 %v2381_v41, %v2380_v1  ;;  %v2383_v38 = vpop.f32.mrb[42].mxu0 }
 0x1d3   : > { %v2446_v58 = vadd.f32 %v2445_v8, %v2444_v48  ;;  %v2447_v10 = vpop.f32.mrb[42].mxu1  ;;  %v2384_v11 = vpop.f32.mrb[43].mxu0 }
 0x1d4   : > { %v2448_v5 = vpop.f32.mrb[43].mxu1  ;;  %v1708_v34 = vadd.f32 %v2382_v18, %v3590_v42  ;;  %v2385_v60 = vadd.f32 %v2384_v11, %v2383_v38 }
 0x1d5   : > { %v2449_v46 = vadd.f32 %v2448_v5, %v2447_v10 }
 0x1d6   : > { %v1711_v36 = vadd.f32 %v2385_v60, %v3593_v0  ;;  %v3639_v62 = vadd.f32 %v2446_v58, %v1708_v34 }
 0x1d8   : > { %v2386_v40 = vpop.f32.mrb[44].mxu0  ;;  %v3641_v50 = vadd.f32 %v2449_v46, %v1711_v36 }
 0x1d9   : > { %v2450_v9 = vpop.f32.mrb[44].mxu1  ;;  %v2387_v37 = vpop.f32.mrb[45].mxu0 }
 0x1da   : > { %v2451_v12 = vpop.f32.mrb[45].mxu1  ;;  %v2388_v25 = vadd.f32 %v2387_v37, %v2386_v40  ;;  %v2389_v59 = vpop.f32.mrb[46].mxu0 }
 0x1db   : > { %v2452_v57 = vadd.f32 %v2451_v12, %v2450_v9  ;;  %v2453_v17 = vpop.f32.mrb[46].mxu1  ;;  %v2390_v20 = vpop.f32.mrb[47].mxu0 }
 0x1dc   : > { %v2454_v24 = vpop.f32.mrb[47].mxu1  ;;  %v1716_v42 = vadd.f32 %v2388_v25, %v3596_v16  ;;  %v2391_v26 = vadd.f32 %v2390_v20, %v2389_v59 }
 0x1dd   : > { %v2455_v28 = vadd.f32 %v2454_v24, %v2453_v17 }
 0x1de   : > { %v1719_v0 = vadd.f32 %v2391_v26, %v3599_v7  ;;  %v3645_v29 = vadd.f32 %v2452_v57, %v1716_v42 }
 0x1e0   : > { %v2392_v31 = vpop.f32.mrb[48].mxu0  ;;  %v3647_v32 = vadd.f32 %v2455_v28, %v1719_v0 }
 0x1e1   : > { %v2456_v27 = vpop.f32.mrb[48].mxu1  ;;  %v2393_v33 = vpop.f32.mrb[49].mxu0 }
 0x1e2   : > { %v2457_v30 = vpop.f32.mrb[49].mxu1  ;;  %v2394_v21 = vadd.f32 %v2393_v33, %v2392_v31  ;;  %v2395_v43 = vpop.f32.mrb[50].mxu0 }
 0x1e3   : > { %v2458_v35 = vadd.f32 %v2457_v30, %v2456_v27  ;;  %v2459_v45 = vpop.f32.mrb[50].mxu1  ;;  %v2396_v51 = vpop.f32.mrb[51].mxu0 }
 0x1e4   : > { %v2460_v52 = vpop.f32.mrb[51].mxu1  ;;  %v1724_v16 = vadd.f32 %v2394_v21, %v3602_v19  ;;  %v2397_v53 = vadd.f32 %v2396_v51, %v2395_v43 }
 0x1e5   : > { %v2461_v54 = vadd.f32 %v2460_v52, %v2459_v45 }
 0x1e6   : > { %v1727_v7 = vadd.f32 %v2397_v53, %v3605_v23  ;;  %v1821_v55 = vadd.f32 %v2458_v35, %v1724_v16 }
 0x1e8   : > { %v2398_v56 = vpop.f32.mrb[52].mxu0  ;;  %v3651_v6 = vadd.f32 %v2461_v54, %v1727_v7 }
 0x1e9   : > { %v2462_v14 = vpop.f32.mrb[52].mxu1  ;;  %v2399_v61 = vpop.f32.mrb[53].mxu0 }
 0x1ea   : > { %v2463_v15 = vpop.f32.mrb[53].mxu1  ;;  %v2400_v1 = vadd.f32 %v2399_v61, %v2398_v56  ;;  %v2401_v41 = vpop.f32.mrb[54].mxu0 }
 0x1eb   : > { %v2464_v48 = vadd.f32 %v2463_v15, %v2462_v14  ;;  %v2465_v8 = vpop.f32.mrb[54].mxu1  ;;  %v2402_v18 = vpop.f32.mrb[55].mxu0 }
 0x1ec   : > { %v2466_v58 = vpop.f32.mrb[55].mxu1  ;;  %v1732_v38 = vadd.f32 %v2400_v1, %v3608_v44  ;;  %v2403_v19 = vadd.f32 %v2402_v18, %v2401_v41 }
 0x1ed   : > { %v2467_v10 = vadd.f32 %v2466_v58, %v2465_v8 }
 0x1ee   : > { %v1735_v11 = vadd.f32 %v2403_v19, %v3611_v47  ;;  %v1829_v23 = vadd.f32 %v2464_v48, %v1732_v38 }
 0x1f0   : > { %v2404_v5 = vpop.f32.mrb[56].mxu0  ;;  %v1832_v60 = vadd.f32 %v2467_v10, %v1735_v11 }
 0x1f1   : > { %v2468_v34 = vpop.f32.mrb[56].mxu1  ;;  %v2405_v46 = vpop.f32.mrb[57].mxu0 }
 0x1f2   : > { %v2469_v36 = vpop.f32.mrb[57].mxu1  ;;  %v2406_v40 = vadd.f32 %v2405_v46, %v2404_v5  ;;  %v2407_v37 = vpop.f32.mrb[58].mxu0 }
 0x1f3   : > { %v2470_v9 = vadd.f32 %v2469_v36, %v2468_v34  ;;  %v2471_v12 = vpop.f32.mrb[58].mxu1  ;;  %v2408_v25 = vpop.f32.mrb[59].mxu0 }
 0x1f4   : > { %v2472_v57 = vpop.f32.mrb[59].mxu1  ;;  %v1740_v59 = vadd.f32 %v2406_v40, %v3614_v2  ;;  %v2409_v44 = vadd.f32 %v2408_v25, %v2407_v37 }
 0x1f5   : > { %v2473_v17 = vadd.f32 %v2472_v57, %v2471_v12 }
 0x1f6   : > { %v1743_v20 = vadd.f32 %v2409_v44, %v3617_v49  ;;  %v1837_v47 = vadd.f32 %v2470_v9, %v1740_v59 }
 0x1f8   : > { %v2410_v24 = vpop.f32.mrb[60].mxu0  ;;  %v3657_v26 = vadd.f32 %v2473_v17, %v1743_v20 }
 0x1f9   : > { %v2474_v42 = vpop.f32.mrb[60].mxu1  ;;  %v2411_v28 = vpop.f32.mrb[61].mxu0 }
 0x1fa   : > { %v2475_v0 = vpop.f32.mrb[61].mxu1  ;;  %v2412_v31 = vadd.f32 %v2411_v28, %v2410_v24  ;;  %v2413_v33 = vpop.f32.mrb[62].mxu0 }
 0x1fb   : > { %v2476_v27 = vadd.f32 %v2475_v0, %v2474_v42  ;;  %v2477_v30 = vpop.f32.mrb[62].mxu1  ;;  %v2414_v21 = vpop.f32.mrb[63].mxu0 }
 0x1fc   : > { %v2478_v35 = vpop.f32.mrb[63].mxu1  ;;  %v1748_v2 = vadd.f32 %v2412_v31, %v3620_v22  ;;  %v2415_v43 = vadd.f32 %v2414_v21, %v2413_v33 }
 0x1fd   : > { %v2479_v49 = vadd.f32 %v2478_v35, %v2477_v30 }
 0x1fe   : > { %v1751_v45 = vadd.f32 %v2415_v43, %v3623_v13  ;;  %v1845_v51 = vadd.f32 %v2476_v27, %v1748_v2 }
 0x200   : > { %v2514_v52 = vpop.f32.mrb[64].mxu0  ;;  %v1848_v53 = vadd.f32 %v2479_v49, %v1751_v45 }
 0x201   : > { %v2522_v16 = vpop.f32.mrb[64].mxu1  ;;  %v1894_v54 = vadd.f32 %v2514_v52, %v3633_v63  ;;  %v1885_v56 = vpop.f32.mrb[65].mxu0 }
 0x202   : > { %v1926_v7 = vadd.f32 %v2522_v16, %v1829_v23  ;;  %v1917_v14 = vpop.f32.mrb[65].mxu1  ;;  %v1886_v61 = vadd.f32 %v1885_v56, %v3627_v4  ;;  %v2515_v15 = vpop.f32.mrb[66].mxu0 }
 0x203   : > { %v1918_v22 = vadd.f32 %v1917_v14, %v1821_v55  ;;  %v2523_v1 = vpop.f32.mrb[66].mxu1  ;;  %1950 = vst [vmem:[%s3668_s7 + $0x10] sm:$0xff] %v1894_v54  ;;  %v1897_v13 = vadd.f32 %v2515_v15, %v3635_v3  ;;  %v1888_v63 = vpop.f32.mrb[67].mxu0 }
 0x204   : > { %1958 = vst [vmem:[%s3668_s7 + $0x50] sm:$0xff] %v1926_v7  ;;  %v1929_v4 = vadd.f32 %v2523_v1, %v1832_v60  ;;  %v1920_v55 = vpop.f32.mrb[67].mxu1  ;;  %1948 = vst [vmem:[%s3668_s7] sm:$0xff] %v1886_v61  ;;  %v1889_v48 = vadd.f32 %v1888_v63, %v3629_v39 }
 0x205   : > { %1956 = vst [vmem:[%s3668_s7 + $0x40] sm:$0xff] %v1918_v22  ;;  %v1921_v41 = vadd.f32 %v1920_v55, %v3651_v6  ;;  %1951 = vst [vmem:[%s3668_s7 + $0x18] sm:$0xff] %v1897_v13 }
 0x206   : > { %1959 = vst [vmem:[%s3668_s7 + $0x58] sm:$0xff] %v1929_v4  ;;  %1949 = vst [vmem:[%s3668_s7 + $0x8] sm:$0xff] %v1889_v48 }
 0x207   : > { %1957 = vst [vmem:[%s3668_s7 + $0x48] sm:$0xff] %v1921_v41 }
 0x208   : > { %v2518_v8 = vpop.f32.mrb[68].mxu0 }
 0x209   : > { %v2526_v18 = vpop.f32.mrb[68].mxu1  ;;  %v1910_v3 = vadd.f32 %v2518_v8, %v3645_v29  ;;  %v1901_v38 = vpop.f32.mrb[69].mxu0 }
 0x20a   : > { %v1942_v58 = vadd.f32 %v2526_v18, %v1845_v51  ;;  %v1933_v39 = vpop.f32.mrb[69].mxu1  ;;  %v1902_v6 = vadd.f32 %v1901_v38, %v3639_v62  ;;  %v2519_v10 = vpop.f32.mrb[70].mxu0 }
 0x20b   : > { %v1934_v19 = vadd.f32 %v1933_v39, %v1837_v47  ;;  %v2527_v11 = vpop.f32.mrb[70].mxu1  ;;  %1954 = vst [vmem:[%s3668_s7 + $0x30] sm:$0xff] %v1910_v3  ;;  %v1913_v23 = vadd.f32 %v2519_v10, %v3647_v32  ;;  %v1904_v5 = vpop.f32.mrb[71].mxu0 }
 0x20c   : > { %1962 = vst [vmem:[%s3668_s7 + $0x70] sm:$0xff] %v1942_v58  ;;  %v1945_v29 = vadd.f32 %v2527_v11, %v1848_v53  ;;  %v1936_v34 = vpop.f32.mrb[71].mxu1  ;;  %1952 = vst [vmem:[%s3668_s7 + $0x20] sm:$0xff] %v1902_v6  ;;  %v1905_v62 = vadd.f32 %v1904_v5, %v3641_v50 }
 0x20d   : > { %1960 = vst [vmem:[%s3668_s7 + $0x60] sm:$0xff] %v1934_v19  ;;  %v1937_v32 = vadd.f32 %v1936_v34, %v3657_v26  ;;  %1955 = vst [vmem:[%s3668_s7 + $0x38] sm:$0xff] %v1913_v23 }
 0x20e   : > { %1963 = vst [vmem:[%s3668_s7 + $0x78] sm:$0xff] %v1945_v29  ;;  %1953 = vst [vmem:[%s3668_s7 + $0x28] sm:$0xff] %v1905_v62 }
 0x20f   : > { %1961 = vst [vmem:[%s3668_s7 + $0x68] sm:$0xff] %v1937_v32 }
 0x210   : > { %2855 = shalt.err (!%p2852_p5)
}
 0x211   : > { %s2856_s20 = scalar_lea.hbm %s3690_s6, 2048  ;;  %s2860_s3 = scalar_lea.hbm %s3811_s2, 8192 }
 0x212   : > { %p2857_p8 = scmp.ne.s32.totalorder %s3690_s6, %s2856_s20  ;;  %p2861_p7 = scmp.lt.u32.totalorder %s3690_s6, %s3811_s2 }
 0x213   : > { %p2862_p9 = scmp.lt.u32.totalorder %s2860_s3, %s2856_s20  ;;  %p2864_p3 = scmp.lt.u32.totalorder %s2856_s20, %s3690_s6 }
 0x214   : > { %p2858_p12 = pnand %p2857_p8, %p3812_p4 }
 0x215   : > { %p2863_p1 = por %p2862_p9, %p2861_p7 }
 0x216   : > { %p2859_p2 = pneg %p2858_p12 }
 0x217   : > { %p2865_p6 = por %p2864_p3, %p2863_p1 }
 0x219   : > { %p2866_p13 = pnand %p2865_p6, %p2859_p2 }
 0x21b   : > { %2869 = shalt.err (!%p2866_p13)
}
 0x21c   : > { %s2976_s29 = smov 128   ;;  %s2977_s7 = smov 8  }
 0x21d   : > { %2557 = dma.vmem_to_hbm [thread:$0]  (%p3812_p4), %s3692_s24, 2048, %s3690_s6, %s3704_s12, %s2976_s29, %s2976_s29, %s2977_s7  }
 0x21e PF: > { %s3813_s18 = sld [smem:[#allocation13_spill]]  ;;  %s3814_s19 = sld [smem:[#allocation16_spill]] }
 0x21f   : > { %p2579_p10 = scmp.ge.s32.totalorder %s2968_s22, 2 }
 0x224   : > { %s1996_s4 = sand.u32 1, %s3813_s18   ;;  %p3815_p11 = scmp.ne.s32.totalorder %s3814_s19, 0 }
 0x225   : > { %s1997_s9 = scalar_lea.sflag [#allocation5], %s1996_s4 }
 0x226   : > { %p2571_p0 = pnand %p2579_p10, %p3815_p11 }
 0x228   : > { %2923 = dma.done.wait (!%p2571_p0), %s1997_s9, 2048  }
 0x229   : > { %2925 = vsyncadd (!%p2571_p0), %s1997_s9, 4294965248  ;;  %s20_s22 = sadd.s32 1, %s2968_s22   ;;  %s3816_s18 = sld [smem:[#allocation14_spill]] }
 0x22a   : > { %p17_p5 = scmp.ge.s32.totalorder %s20_s22, 6   ;;  %s3817_s24 = sld [smem:[#allocation17_spill]] }
 0x22b   : > { %s3818_s12 = smov %s2932_s13  ;;  %s3819_s13 = smov %s2936_s14 }
 0x22c   : > { %s3820_s14 = smov %s3170_s8  ;;  %s3821_s15 = smov %s2944_s16 }
 0x22d   : > { %s3822_s16 = smov %s2948_s17  ;;  %s3823_s17 = smov %s3173_s1 }
 0x22e   : > { %s3824_s19 = smov %s2964_s21  ;;  %s3825_s20 = smov %s3828_s10 }
 0x22f   :  { %19 = sbr.rel (!%p17_p5) target bundleno = 14 (0xe), region = 85 }
 0x230   : > { %s3826_s21 = smov %s3817_s24 }
 0x236   :  { %2002 = vsyncpa [#allocation4], 1 }
 0x237   :  { %2004 = vsyncpa [#allocation4 + $0x1], 1 }
 0x238   :  { %2005 = vsyncpa [#allocation7], 1 }
 0x239   :  { %2006 = vsyncpa [#allocation5], 1 }
 0x23a   :  { %2008 = vsyncpa [#allocation5 + $0x1], 1 }

</bundles_post_ra>
